<compile_context>
chip_gen: v6e
topology: v6e:2x2x1
jax: 0.10.0
libtpu: 0.0.40
codegen_flags: <defaults>
</compile_context>

<pallas_src>
import jax
import jax.numpy as jnp
from jax import lax
from jax.experimental import pallas as pl
from jax.experimental.pallas import tpu as pltpu

# ---------------- small synthetic ViT config ----------------
BATCH = 2
IN_CH = 3
IMG = 16
PATCH = 8
NUM_PATCHES = (IMG // PATCH) ** 2          # 4
SEQ = NUM_PATCHES + 1                      # 5 (CLS + patches)
ROWS = BATCH * SEQ                         # 10 token rows, kept VMEM-resident
PATCH_DIM = IN_CH * PATCH * PATCH          # 192
HIDDEN = 32
NUM_HEADS = 4
HEAD_DIM = HIDDEN // NUM_HEADS             # 8
MLP = 64
LAYERS = 2
NUM_CLASSES = 10
LANE = 128                                 # lane-dense logits width
LN_EPS = 1e-12                             # HF ViT layer_norm_eps
SCALE = 1.0 / (HEAD_DIM ** 0.5)

_GELU_C = 0.7978845608028654               # sqrt(2/pi)


# ---------------- in-kernel math helpers (f32 elementwise) ----------------
def _gelu(x):
    # tanh-approx GELU: transcendental goes to the EUP slot instead of VALU polys.
    return 0.5 * x * (1.0 + jnp.tanh(_GELU_C * (x + 0.044715 * x * x * x)))


def _layernorm(x, g, b):
    mu = jnp.mean(x, axis=-1, keepdims=True)
    var = jnp.mean(jnp.square(x - mu), axis=-1, keepdims=True)
    return (x - mu) * lax.rsqrt(var + LN_EPS) * g + b


def _bf16(x):
    return x.astype(jnp.bfloat16)


# ---------------- fused ViT kernel (single invocation, no grid) ----------------
def _vit_fused_kernel(xp_ref, base_ref, bias_ref, pw_ref,
                      ln1g_ref, ln1b_ref, wqkv_ref, bqkv_ref, wo_ref, bo_ref,
                      ln2g_ref, ln2b_ref, w1_ref, b1_ref, w2_ref, b2_ref,
                      lnfg_ref, lnfb_ref, clsw_ref, clsb_ref,
                      logits_ref, ctx_ref):
    # Patch embedding: xp has zero rows at the CLS slots; `base` already carries
    # cls_token + position embeddings + patch bias.  Operands are bf16, f32 accum.
    x = base_ref[...] + jnp.dot(xp_ref[...], pw_ref[...],
                                preferred_element_type=jnp.float32)
    bias = bias_ref[...]                                        # (ROWS, ROWS) block-diag

    # ---- transformer layers: static unroll, weights indexed statically ----
    for l in range(LAYERS):
        # attention block (pre-LN); 1/sqrt(dh) is pre-folded into Wq/bq.
        ln1 = _layernorm(x, ln1g_ref[l], ln1b_ref[l])
        qkv = jnp.dot(_bf16(ln1), wqkv_ref[l],
                      preferred_element_type=jnp.float32) + bqkv_ref[l]   # (ROWS, 3H)
        for h in range(NUM_HEADS):
            lo = h * HEAD_DIM
            qh = _bf16(qkv[:, lo:lo + HEAD_DIM])
            kh = _bf16(qkv[:, HIDDEN + lo:HIDDEN + lo + HEAD_DIM])
            vh = _bf16(qkv[:, 2 * HIDDEN + lo:2 * HIDDEN + lo + HEAD_DIM])
            # One score matmul per head over ALL batch rows; cross-image pairs masked.
            s = lax.dot_general(qh, kh, (((1,), (1,)), ((), ())),
                                preferred_element_type=jnp.float32) + bias
            m = jnp.max(s, axis=-1, keepdims=True)
            p = jnp.exp(s - m)
            p = p * pl.reciprocal(jnp.sum(p, axis=-1, keepdims=True), approx=True)
            # Stage this head's context at its lane offset (static store), so the
            # out-projection is a single full-width dot below.
            ctx_ref[:, lo:lo + HEAD_DIM] = _bf16(
                jnp.dot(_bf16(p), vh, preferred_element_type=jnp.float32))
        attn = jnp.dot(ctx_ref[...], wo_ref[l],
                       preferred_element_type=jnp.float32)      # (ROWS, HIDDEN)
        h2 = x + attn + bo_ref[l]                               # residual

        # MLP block (pre-LN)
        ln2 = _layernorm(h2, ln2g_ref[l], ln2b_ref[l])
        ff = _gelu(jnp.dot(_bf16(ln2), w1_ref[l],
                           preferred_element_type=jnp.float32) + b1_ref[l])
        x = h2 + jnp.dot(_bf16(ff), w2_ref[l],
                         preferred_element_type=jnp.float32) + b2_ref[l]

    # ---- final LN + classifier on ALL rows; lane-dense (ROWS, 128) store ----
    lnf = _layernorm(x, lnfg_ref[...], lnfb_ref[...])
    logits_ref[...] = jnp.dot(_bf16(lnf), clsw_ref[...],
                              preferred_element_type=jnp.float32) + clsb_ref[...]


# ---------------- deterministic parameter init ----------------
def init_params(key):
    def nrm(k, shape):
        return 0.02 * jax.random.normal(k, shape, jnp.float32)

    keys = iter(jax.random.split(key, 4 + LAYERS * 6))
    zeros = lambda n: jnp.zeros((1, n), jnp.float32)
    ones = lambda n: jnp.ones((1, n), jnp.float32)

    params = {
        "patch_w": nrm(next(keys), (PATCH_DIM, HIDDEN)),
        "patch_b": zeros(HIDDEN),
        "cls": nrm(next(keys), (1, 1, HIDDEN)),
        "pos": nrm(next(keys), (1, SEQ, HIDDEN)),
        "ln_f_g": ones(HIDDEN),
        "ln_f_b": zeros(HIDDEN),
        "cls_w": nrm(next(keys), (HIDDEN, NUM_CLASSES)),
        "cls_b": zeros(NUM_CLASSES),
        "layers": [],
    }
    for _ in range(LAYERS):
        params["layers"].append({
            "ln1_g": ones(HIDDEN), "ln1_b": zeros(HIDDEN),
            "wq": nrm(next(keys), (HIDDEN, HIDDEN)), "bq": zeros(HIDDEN),
            "wk": nrm(next(keys), (HIDDEN, HIDDEN)), "bk": zeros(HIDDEN),
            "wv": nrm(next(keys), (HIDDEN, HIDDEN)), "bv": zeros(HIDDEN),
            "wo": nrm(next(keys), (HIDDEN, HIDDEN)), "bo": zeros(HIDDEN),
            "ln2_g": ones(HIDDEN), "ln2_b": zeros(HIDDEN),
            "w1": nrm(next(keys), (HIDDEN, MLP)), "b1": zeros(MLP),
            "w2": nrm(next(keys), (MLP, HIDDEN)), "b2": zeros(HIDDEN),
        })
    return params


# ---------------- forward pass ----------------
def vit_forward(x_nchw, params):
    assert x_nchw.shape == (BATCH, IN_CH, IMG, IMG), x_nchw.shape
    p = PATCH

    # Patchify NCHW -> (B, NP, C*p*p); insert a zero row per image at the CLS slot
    # so one in-kernel dot produces the embeddings for all ROWS rows.
    xp = x_nchw.reshape(BATCH, IN_CH, IMG // p, p, IMG // p, p)
    xp = xp.transpose(0, 2, 4, 1, 3, 5).reshape(BATCH, NUM_PATCHES, PATCH_DIM)
    xp_full = jnp.concatenate(
        [jnp.zeros((BATCH, 1, PATCH_DIM), jnp.float32), xp], axis=1
    ).reshape(ROWS, PATCH_DIM).astype(jnp.bfloat16)

    # base rows: CLS row = cls_token + pos[0]; patch row i = pos[i] + patch_bias.
    pos = params["pos"][0]                                       # (SEQ, HIDDEN)
    cls_row = params["cls"].reshape(1, HIDDEN) + pos[0:1]
    base = jnp.tile(
        jnp.concatenate([cls_row, pos[1:] + params["patch_b"]], axis=0),
        (BATCH, 1))                                              # (ROWS, HIDDEN) f32

    # Block-diagonal additive mask: tokens only attend within their own image.
    rb = jnp.arange(ROWS) // SEQ
    attn_bias = jnp.where(rb[:, None] == rb[None, :], 0.0, -1e30).astype(jnp.float32)

    # Stack per-layer weights into (LAYERS, ...) slabs; matmul weights in bf16.
    # Fuse Wq|Wk|Wv -> (H, 3H) and fold the 1/sqrt(head_dim) scale into Wq/bq.
    L = params["layers"]
    stack = lambda name: jnp.stack([lp[name] for lp in L], axis=0)
    stack_bf = lambda name: stack(name).astype(jnp.bfloat16)
    wqkv = jnp.stack(
        [jnp.concatenate([lp["wq"] * SCALE, lp["wk"], lp["wv"]], axis=1) for lp in L],
        axis=0).astype(jnp.bfloat16)
    bqkv = jnp.stack(
        [jnp.concatenate([lp["bq"] * SCALE, lp["bk"], lp["bv"]], axis=1) for lp in L],
        axis=0)

    # Lane-pad the classifier to 128 so the logits store is lane-dense.
    clsw = (jnp.zeros((HIDDEN, LANE), jnp.float32)
            .at[:, :NUM_CLASSES].set(params["cls_w"])).astype(jnp.bfloat16)
    clsb = jnp.zeros((1, LANE), jnp.float32).at[:, :NUM_CLASSES].set(params["cls_b"])

    inputs = (
        xp_full, base, attn_bias, params["patch_w"].astype(jnp.bfloat16),
        stack("ln1_g"), stack("ln1_b"), wqkv, bqkv,
        stack_bf("wo"), stack("bo"), stack("ln2_g"), stack("ln2_b"),
        stack_bf("w1"), stack("b1"), stack_bf("w2"), stack("b2"),
        params["ln_f_g"], params["ln_f_b"], clsw, clsb,
    )

    logits_all = pl.pallas_call(
        _vit_fused_kernel,
        out_shape=jax.ShapeDtypeStruct((ROWS, LANE), jnp.float32),
        scratch_shapes=[pltpu.VMEM((ROWS, HIDDEN), jnp.bfloat16)],
    )(*inputs)

    # Pick each image's CLS row and the real class columns outside the kernel.
    return logits_all[0::SEQ, :NUM_CLASSES]


if __name__ == "__main__":
    key = jax.random.PRNGKey(0)
    pkey, xkey = jax.random.split(key)
    params = init_params(pkey)
    x = jax.random.normal(xkey, (BATCH, IN_CH, IMG, IMG), jnp.float32)

    logits = jax.jit(vit_forward)(x, params)
    jax.block_until_ready(logits)

    assert logits.shape == (BATCH, NUM_CLASSES), logits.shape
    assert bool(jnp.all(jnp.isfinite(logits)))
    print("KERNEL_OK")
</pallas_src>

<mosaic_0001>
module attributes {stable_mosaic.version = 11 : i64} {
  func.func @_vit_fused_kernel(%arg0: memref<10x192xbf16, #tpu.memory_space<vmem>>, %arg1: memref<10x32xf32, #tpu.memory_space<vmem>>, %arg2: memref<10x10xf32, #tpu.memory_space<vmem>>, %arg3: memref<192x32xbf16, #tpu.memory_space<vmem>>, %arg4: memref<2x1x32xf32, #tpu.memory_space<vmem>>, %arg5: memref<2x1x32xf32, #tpu.memory_space<vmem>>, %arg6: memref<2x32x96xbf16, #tpu.memory_space<vmem>>, %arg7: memref<2x1x96xf32, #tpu.memory_space<vmem>>, %arg8: memref<2x32x32xbf16, #tpu.memory_space<vmem>>, %arg9: memref<2x1x32xf32, #tpu.memory_space<vmem>>, %arg10: memref<2x1x32xf32, #tpu.memory_space<vmem>>, %arg11: memref<2x1x32xf32, #tpu.memory_space<vmem>>, %arg12: memref<2x32x64xbf16, #tpu.memory_space<vmem>>, %arg13: memref<2x1x64xf32, #tpu.memory_space<vmem>>, %arg14: memref<2x64x32xbf16, #tpu.memory_space<vmem>>, %arg15: memref<2x1x32xf32, #tpu.memory_space<vmem>>, %arg16: memref<1x32xf32, #tpu.memory_space<vmem>>, %arg17: memref<1x32xf32, #tpu.memory_space<vmem>>, %arg18: memref<32x128xbf16, #tpu.memory_space<vmem>>, %arg19: memref<1x128xf32, #tpu.memory_space<vmem>>, %arg20: memref<10x128xf32, #tpu.memory_space<vmem>>, %arg21: memref<10x32xbf16, #tpu.memory_space<vmem>>) attributes {dimension_semantics = [], scalar_prefetch = 0 : i64, scratch_operands = 1 : i64, tpu.core_type = #tpu.core_type<tc>} {
    %c0 = arith.constant 0 : index
    %c0_0 = arith.constant 0 : index
    %0 = vector.load %arg1[%c0, %c0_0] : memref<10x32xf32, #tpu.memory_space<vmem>>, vector<10x32xf32>
    %c0_1 = arith.constant 0 : index
    %c0_2 = arith.constant 0 : index
    %1 = vector.load %arg0[%c0_1, %c0_2] : memref<10x192xbf16, #tpu.memory_space<vmem>>, vector<10x192xbf16>
    %c0_3 = arith.constant 0 : index
    %c0_4 = arith.constant 0 : index
    %2 = vector.load %arg3[%c0_3, %c0_4] : memref<192x32xbf16, #tpu.memory_space<vmem>>, vector<192x32xbf16>
    %cst = arith.constant dense<0.000000e+00> : vector<10x32xf32>
    %3 = tpu.matmul %1, %2, %cst {dimension_numbers = #tpu.dot_dimension_numbers<[1], [0], [0], [1], [0, 0, 1, 1], [], []>} : vector<10x192xbf16>, vector<192x32xbf16>, vector<10x32xf32> -> vector<10x32xf32>
    %4 = arith.addf %0, %3 : vector<10x32xf32>
    %c0_5 = arith.constant 0 : index
    %c0_6 = arith.constant 0 : index
    %5 = vector.load %arg2[%c0_5, %c0_6] : memref<10x10xf32, #tpu.memory_space<vmem>>, vector<10x10xf32>
    %c0_7 = arith.constant 0 : index
    %c0_8 = arith.constant 0 : index
    %c0_9 = arith.constant 0 : index
    %6 = vector.load %arg4[%c0_7, %c0_8, %c0_9] : memref<2x1x32xf32, #tpu.memory_space<vmem>>, vector<1x1x32xf32>
    %7 = vector.shape_cast %6 : vector<1x1x32xf32> to vector<1x32xf32>
    %c0_10 = arith.constant 0 : index
    %c0_11 = arith.constant 0 : index
    %c0_12 = arith.constant 0 : index
    %8 = vector.load %arg5[%c0_10, %c0_11, %c0_12] : memref<2x1x32xf32, #tpu.memory_space<vmem>>, vector<1x1x32xf32>
    %9 = vector.shape_cast %8 : vector<1x1x32xf32> to vector<1x32xf32>
    %cst_13 = arith.constant dense<0.000000e+00> : vector<10xf32>
    %10 = vector.multi_reduction <add>, %4, %cst_13 [1] : vector<10x32xf32> to vector<10xf32>
    %11 = vector.shape_cast %10 : vector<10xf32> to vector<10x1xf32>
    %cst_14 = arith.constant 3.200000e+01 : f32
    %12 = vector.broadcast %cst_14 : f32 to vector<10x1xf32>
    %13 = arith.divf %11, %12 : vector<10x1xf32>
    %14 = vector.broadcast %13 : vector<10x1xf32> to vector<10x32xf32>
    %15 = arith.subf %4, %14 : vector<10x32xf32>
    %16 = arith.mulf %15, %15 : vector<10x32xf32>
    %cst_15 = arith.constant dense<0.000000e+00> : vector<10xf32>
    %17 = vector.multi_reduction <add>, %16, %cst_15 [1] : vector<10x32xf32> to vector<10xf32>
    %18 = vector.shape_cast %17 : vector<10xf32> to vector<10x1xf32>
    %cst_16 = arith.constant 3.200000e+01 : f32
    %19 = vector.broadcast %cst_16 : f32 to vector<10x1xf32>
    %20 = arith.divf %18, %19 : vector<10x1xf32>
    %21 = vector.broadcast %13 : vector<10x1xf32> to vector<10x32xf32>
    %22 = arith.subf %4, %21 : vector<10x32xf32>
    %cst_17 = arith.constant 9.99999996E-13 : f32
    %23 = vector.broadcast %cst_17 : f32 to vector<10x1xf32>
    %24 = arith.addf %20, %23 : vector<10x1xf32>
    %25 = math.rsqrt %24 : vector<10x1xf32>
    %26 = vector.broadcast %25 : vector<10x1xf32> to vector<10x32xf32>
    %27 = arith.mulf %22, %26 : vector<10x32xf32>
    %28 = vector.broadcast %7 : vector<1x32xf32> to vector<10x32xf32>
    %29 = arith.mulf %27, %28 : vector<10x32xf32>
    %30 = vector.broadcast %9 : vector<1x32xf32> to vector<10x32xf32>
    %31 = arith.addf %29, %30 : vector<10x32xf32>
    %32 = arith.truncf %31 : vector<10x32xf32> to vector<10x32xbf16>
    %c0_18 = arith.constant 0 : index
    %c0_19 = arith.constant 0 : index
    %c0_20 = arith.constant 0 : index
    %33 = vector.load %arg6[%c0_18, %c0_19, %c0_20] : memref<2x32x96xbf16, #tpu.memory_space<vmem>>, vector<1x32x96xbf16>
    %34 = vector.shape_cast %33 : vector<1x32x96xbf16> to vector<32x96xbf16>
    %cst_21 = arith.constant dense<0.000000e+00> : vector<10x96xf32>
    %35 = tpu.matmul %32, %34, %cst_21 {dimension_numbers = #tpu.dot_dimension_numbers<[1], [0], [0], [1], [0, 0, 1, 1], [], []>} : vector<10x32xbf16>, vector<32x96xbf16>, vector<10x96xf32> -> vector<10x96xf32>
    %c0_22 = arith.constant 0 : index
    %c0_23 = arith.constant 0 : index
    %c0_24 = arith.constant 0 : index
    %36 = vector.load %arg7[%c0_22, %c0_23, %c0_24] : memref<2x1x96xf32, #tpu.memory_space<vmem>>, vector<1x1x96xf32>
    %37 = vector.shape_cast %36 : vector<1x1x96xf32> to vector<1x96xf32>
    %38 = vector.broadcast %37 : vector<1x96xf32> to vector<10x96xf32>
    %39 = arith.addf %35, %38 : vector<10x96xf32>
    %40 = vector.extract_strided_slice %39 {offsets = [0, 0], sizes = [10, 8], strides = [1, 1]} : vector<10x96xf32> to vector<10x8xf32>
    %41 = arith.truncf %40 : vector<10x8xf32> to vector<10x8xbf16>
    %42 = vector.extract_strided_slice %39 {offsets = [0, 32], sizes = [10, 8], strides = [1, 1]} : vector<10x96xf32> to vector<10x8xf32>
    %43 = arith.truncf %42 : vector<10x8xf32> to vector<10x8xbf16>
    %44 = vector.extract_strided_slice %39 {offsets = [0, 64], sizes = [10, 8], strides = [1, 1]} : vector<10x96xf32> to vector<10x8xf32>
    %45 = arith.truncf %44 : vector<10x8xf32> to vector<10x8xbf16>
    %cst_25 = arith.constant dense<0.000000e+00> : vector<10x10xf32>
    %46 = tpu.matmul %41, %43, %cst_25 {dimension_numbers = #tpu.dot_dimension_numbers<[1], [1], [0], [0], [0, 0, 1, 0], [], []>} : vector<10x8xbf16>, vector<10x8xbf16>, vector<10x10xf32> -> vector<10x10xf32>
    %47 = arith.addf %46, %5 : vector<10x10xf32>
    %cst_26 = arith.constant dense<0xFF800000> : vector<10xf32>
    %48 = vector.multi_reduction <maximumf>, %47, %cst_26 [1] : vector<10x10xf32> to vector<10xf32>
    %49 = vector.shape_cast %48 : vector<10xf32> to vector<10x1xf32>
    %50 = vector.broadcast %49 : vector<10x1xf32> to vector<10x10xf32>
    %51 = arith.subf %47, %50 : vector<10x10xf32>
    %52 = math.exp %51 : vector<10x10xf32>
    %cst_27 = arith.constant dense<0.000000e+00> : vector<10xf32>
    %53 = vector.multi_reduction <add>, %52, %cst_27 [1] : vector<10x10xf32> to vector<10xf32>
    %54 = vector.shape_cast %53 : vector<10xf32> to vector<10x1xf32>
    %55 = tpu.reciprocal %54 {approx = true} : vector<10x1xf32> -> vector<10x1xf32>
    %56 = vector.broadcast %55 : vector<10x1xf32> to vector<10x10xf32>
    %57 = arith.mulf %52, %56 : vector<10x10xf32>
    %58 = arith.truncf %57 : vector<10x10xf32> to vector<10x10xbf16>
    %cst_28 = arith.constant dense<0.000000e+00> : vector<10x8xf32>
    %59 = tpu.matmul %58, %45, %cst_28 {dimension_numbers = #tpu.dot_dimension_numbers<[1], [0], [0], [1], [0, 0, 1, 1], [], []>} : vector<10x10xbf16>, vector<10x8xbf16>, vector<10x8xf32> -> vector<10x8xf32>
    %60 = arith.truncf %59 : vector<10x8xf32> to vector<10x8xbf16>
    %c0_29 = arith.constant 0 : index
    %c0_30 = arith.constant 0 : index
    %61 = vector.load %arg21[%c0_29, %c0_30] : memref<10x32xbf16, #tpu.memory_space<vmem>>, vector<10x8xbf16>
    tpu.vector_store %arg21[%c0_29, %c0_30], %60 {strides = array<i32>} : memref<10x32xbf16, #tpu.memory_space<vmem>>, vector<10x8xbf16>,
    %62 = vector.extract_strided_slice %39 {offsets = [0, 8], sizes = [10, 8], strides = [1, 1]} : vector<10x96xf32> to vector<10x8xf32>
    %63 = arith.truncf %62 : vector<10x8xf32> to vector<10x8xbf16>
    %64 = vector.extract_strided_slice %39 {offsets = [0, 40], sizes = [10, 8], strides = [1, 1]} : vector<10x96xf32> to vector<10x8xf32>
    %65 = arith.truncf %64 : vector<10x8xf32> to vector<10x8xbf16>
    %66 = vector.extract_strided_slice %39 {offsets = [0, 72], sizes = [10, 8], strides = [1, 1]} : vector<10x96xf32> to vector<10x8xf32>
    %67 = arith.truncf %66 : vector<10x8xf32> to vector<10x8xbf16>
    %cst_31 = arith.constant dense<0.000000e+00> : vector<10x10xf32>
    %68 = tpu.matmul %63, %65, %cst_31 {dimension_numbers = #tpu.dot_dimension_numbers<[1], [1], [0], [0], [0, 0, 1, 0], [], []>} : vector<10x8xbf16>, vector<10x8xbf16>, vector<10x10xf32> -> vector<10x10xf32>
    %69 = arith.addf %68, %5 : vector<10x10xf32>
    %cst_32 = arith.constant dense<0xFF800000> : vector<10xf32>
    %70 = vector.multi_reduction <maximumf>, %69, %cst_32 [1] : vector<10x10xf32> to vector<10xf32>
    %71 = vector.shape_cast %70 : vector<10xf32> to vector<10x1xf32>
    %72 = vector.broadcast %71 : vector<10x1xf32> to vector<10x10xf32>
    %73 = arith.subf %69, %72 : vector<10x10xf32>
    %74 = math.exp %73 : vector<10x10xf32>
    %cst_33 = arith.constant dense<0.000000e+00> : vector<10xf32>
    %75 = vector.multi_reduction <add>, %74, %cst_33 [1] : vector<10x10xf32> to vector<10xf32>
    %76 = vector.shape_cast %75 : vector<10xf32> to vector<10x1xf32>
    %77 = tpu.reciprocal %76 {approx = true} : vector<10x1xf32> -> vector<10x1xf32>
    %78 = vector.broadcast %77 : vector<10x1xf32> to vector<10x10xf32>
    %79 = arith.mulf %74, %78 : vector<10x10xf32>
    %80 = arith.truncf %79 : vector<10x10xf32> to vector<10x10xbf16>
    %cst_34 = arith.constant dense<0.000000e+00> : vector<10x8xf32>
    %81 = tpu.matmul %80, %67, %cst_34 {dimension_numbers = #tpu.dot_dimension_numbers<[1], [0], [0], [1], [0, 0, 1, 1], [], []>} : vector<10x10xbf16>, vector<10x8xbf16>, vector<10x8xf32> -> vector<10x8xf32>
    %82 = arith.truncf %81 : vector<10x8xf32> to vector<10x8xbf16>
    %c0_35 = arith.constant 0 : index
    %c8 = arith.constant 8 : index
    %83 = vector.load %arg21[%c0_35, %c8] : memref<10x32xbf16, #tpu.memory_space<vmem>>, vector<10x8xbf16>
    tpu.vector_store %arg21[%c0_35, %c8], %82 {strides = array<i32>} : memref<10x32xbf16, #tpu.memory_space<vmem>>, vector<10x8xbf16>,
    %84 = vector.extract_strided_slice %39 {offsets = [0, 16], sizes = [10, 8], strides = [1, 1]} : vector<10x96xf32> to vector<10x8xf32>
    %85 = arith.truncf %84 : vector<10x8xf32> to vector<10x8xbf16>
    %86 = vector.extract_strided_slice %39 {offsets = [0, 48], sizes = [10, 8], strides = [1, 1]} : vector<10x96xf32> to vector<10x8xf32>
    %87 = arith.truncf %86 : vector<10x8xf32> to vector<10x8xbf16>
    %88 = vector.extract_strided_slice %39 {offsets = [0, 80], sizes = [10, 8], strides = [1, 1]} : vector<10x96xf32> to vector<10x8xf32>
    %89 = arith.truncf %88 : vector<10x8xf32> to vector<10x8xbf16>
    %cst_36 = arith.constant dense<0.000000e+00> : vector<10x10xf32>
    %90 = tpu.matmul %85, %87, %cst_36 {dimension_numbers = #tpu.dot_dimension_numbers<[1], [1], [0], [0], [0, 0, 1, 0], [], []>} : vector<10x8xbf16>, vector<10x8xbf16>, vector<10x10xf32> -> vector<10x10xf32>
    %91 = arith.addf %90, %5 : vector<10x10xf32>
    %cst_37 = arith.constant dense<0xFF800000> : vector<10xf32>
    %92 = vector.multi_reduction <maximumf>, %91, %cst_37 [1] : vector<10x10xf32> to vector<10xf32>
    %93 = vector.shape_cast %92 : vector<10xf32> to vector<10x1xf32>
    %94 = vector.broadcast %93 : vector<10x1xf32> to vector<10x10xf32>
    %95 = arith.subf %91, %94 : vector<10x10xf32>
    %96 = math.exp %95 : vector<10x10xf32>
    %cst_38 = arith.constant dense<0.000000e+00> : vector<10xf32>
    %97 = vector.multi_reduction <add>, %96, %cst_38 [1] : vector<10x10xf32> to vector<10xf32>
    %98 = vector.shape_cast %97 : vector<10xf32> to vector<10x1xf32>
    %99 = tpu.reciprocal %98 {approx = true} : vector<10x1xf32> -> vector<10x1xf32>
    %100 = vector.broadcast %99 : vector<10x1xf32> to vector<10x10xf32>
    %101 = arith.mulf %96, %100 : vector<10x10xf32>
    %102 = arith.truncf %101 : vector<10x10xf32> to vector<10x10xbf16>
    %cst_39 = arith.constant dense<0.000000e+00> : vector<10x8xf32>
    %103 = tpu.matmul %102, %89, %cst_39 {dimension_numbers = #tpu.dot_dimension_numbers<[1], [0], [0], [1], [0, 0, 1, 1], [], []>} : vector<10x10xbf16>, vector<10x8xbf16>, vector<10x8xf32> -> vector<10x8xf32>
    %104 = arith.truncf %103 : vector<10x8xf32> to vector<10x8xbf16>
    %c0_40 = arith.constant 0 : index
    %c16 = arith.constant 16 : index
    %105 = vector.load %arg21[%c0_40, %c16] : memref<10x32xbf16, #tpu.memory_space<vmem>>, vector<10x8xbf16>
    tpu.vector_store %arg21[%c0_40, %c16], %104 {strides = array<i32>} : memref<10x32xbf16, #tpu.memory_space<vmem>>, vector<10x8xbf16>,
    %106 = vector.extract_strided_slice %39 {offsets = [0, 24], sizes = [10, 8], strides = [1, 1]} : vector<10x96xf32> to vector<10x8xf32>
    %107 = arith.truncf %106 : vector<10x8xf32> to vector<10x8xbf16>
    %108 = vector.extract_strided_slice %39 {offsets = [0, 56], sizes = [10, 8], strides = [1, 1]} : vector<10x96xf32> to vector<10x8xf32>
    %109 = arith.truncf %108 : vector<10x8xf32> to vector<10x8xbf16>
    %110 = vector.extract_strided_slice %39 {offsets = [0, 88], sizes = [10, 8], strides = [1, 1]} : vector<10x96xf32> to vector<10x8xf32>
    %111 = arith.truncf %110 : vector<10x8xf32> to vector<10x8xbf16>
    %cst_41 = arith.constant dense<0.000000e+00> : vector<10x10xf32>
    %112 = tpu.matmul %107, %109, %cst_41 {dimension_numbers = #tpu.dot_dimension_numbers<[1], [1], [0], [0], [0, 0, 1, 0], [], []>} : vector<10x8xbf16>, vector<10x8xbf16>, vector<10x10xf32> -> vector<10x10xf32>
    %113 = arith.addf %112, %5 : vector<10x10xf32>
    %cst_42 = arith.constant dense<0xFF800000> : vector<10xf32>
    %114 = vector.multi_reduction <maximumf>, %113, %cst_42 [1] : vector<10x10xf32> to vector<10xf32>
    %115 = vector.shape_cast %114 : vector<10xf32> to vector<10x1xf32>
    %116 = vector.broadcast %115 : vector<10x1xf32> to vector<10x10xf32>
    %117 = arith.subf %113, %116 : vector<10x10xf32>
    %118 = math.exp %117 : vector<10x10xf32>
    %cst_43 = arith.constant dense<0.000000e+00> : vector<10xf32>
    %119 = vector.multi_reduction <add>, %118, %cst_43 [1] : vector<10x10xf32> to vector<10xf32>
    %120 = vector.shape_cast %119 : vector<10xf32> to vector<10x1xf32>
    %121 = tpu.reciprocal %120 {approx = true} : vector<10x1xf32> -> vector<10x1xf32>
    %122 = vector.broadcast %121 : vector<10x1xf32> to vector<10x10xf32>
    %123 = arith.mulf %118, %122 : vector<10x10xf32>
    %124 = arith.truncf %123 : vector<10x10xf32> to vector<10x10xbf16>
    %cst_44 = arith.constant dense<0.000000e+00> : vector<10x8xf32>
    %125 = tpu.matmul %124, %111, %cst_44 {dimension_numbers = #tpu.dot_dimension_numbers<[1], [0], [0], [1], [0, 0, 1, 1], [], []>} : vector<10x10xbf16>, vector<10x8xbf16>, vector<10x8xf32> -> vector<10x8xf32>
    %126 = arith.truncf %125 : vector<10x8xf32> to vector<10x8xbf16>
    %c0_45 = arith.constant 0 : index
    %c24 = arith.constant 24 : index
    %127 = vector.load %arg21[%c0_45, %c24] : memref<10x32xbf16, #tpu.memory_space<vmem>>, vector<10x8xbf16>
    tpu.vector_store %arg21[%c0_45, %c24], %126 {strides = array<i32>} : memref<10x32xbf16, #tpu.memory_space<vmem>>, vector<10x8xbf16>,
    %c0_46 = arith.constant 0 : index
    %c0_47 = arith.constant 0 : index
    %128 = vector.load %arg21[%c0_46, %c0_47] : memref<10x32xbf16, #tpu.memory_space<vmem>>, vector<10x32xbf16>
    %c0_48 = arith.constant 0 : index
    %c0_49 = arith.constant 0 : index
    %c0_50 = arith.constant 0 : index
    %129 = vector.load %arg8[%c0_48, %c0_49, %c0_50] : memref<2x32x32xbf16, #tpu.memory_space<vmem>>, vector<1x32x32xbf16>
    %130 = vector.shape_cast %129 : vector<1x32x32xbf16> to vector<32x32xbf16>
    %cst_51 = arith.constant dense<0.000000e+00> : vector<10x32xf32>
    %131 = tpu.matmul %128, %130, %cst_51 {dimension_numbers = #tpu.dot_dimension_numbers<[1], [0], [0], [1], [0, 0, 1, 1], [], []>} : vector<10x32xbf16>, vector<32x32xbf16>, vector<10x32xf32> -> vector<10x32xf32>
    %132 = arith.addf %4, %131 : vector<10x32xf32>
    %c0_52 = arith.constant 0 : index
    %c0_53 = arith.constant 0 : index
    %c0_54 = arith.constant 0 : index
    %133 = vector.load %arg9[%c0_52, %c0_53, %c0_54] : memref<2x1x32xf32, #tpu.memory_space<vmem>>, vector<1x1x32xf32>
    %134 = vector.shape_cast %133 : vector<1x1x32xf32> to vector<1x32xf32>
    %135 = vector.broadcast %134 : vector<1x32xf32> to vector<10x32xf32>
    %136 = arith.addf %132, %135 : vector<10x32xf32>
    %c0_55 = arith.constant 0 : index
    %c0_56 = arith.constant 0 : index
    %c0_57 = arith.constant 0 : index
    %137 = vector.load %arg10[%c0_55, %c0_56, %c0_57] : memref<2x1x32xf32, #tpu.memory_space<vmem>>, vector<1x1x32xf32>
    %138 = vector.shape_cast %137 : vector<1x1x32xf32> to vector<1x32xf32>
    %c0_58 = arith.constant 0 : index
    %c0_59 = arith.constant 0 : index
    %c0_60 = arith.constant 0 : index
    %139 = vector.load %arg11[%c0_58, %c0_59, %c0_60] : memref<2x1x32xf32, #tpu.memory_space<vmem>>, vector<1x1x32xf32>
    %140 = vector.shape_cast %139 : vector<1x1x32xf32> to vector<1x32xf32>
    %cst_61 = arith.constant dense<0.000000e+00> : vector<10xf32>
    %141 = vector.multi_reduction <add>, %136, %cst_61 [1] : vector<10x32xf32> to vector<10xf32>
    %142 = vector.shape_cast %141 : vector<10xf32> to vector<10x1xf32>
    %cst_62 = arith.constant 3.200000e+01 : f32
    %143 = vector.broadcast %cst_62 : f32 to vector<10x1xf32>
    %144 = arith.divf %142, %143 : vector<10x1xf32>
    %145 = vector.broadcast %144 : vector<10x1xf32> to vector<10x32xf32>
    %146 = arith.subf %136, %145 : vector<10x32xf32>
    %147 = arith.mulf %146, %146 : vector<10x32xf32>
    %cst_63 = arith.constant dense<0.000000e+00> : vector<10xf32>
    %148 = vector.multi_reduction <add>, %147, %cst_63 [1] : vector<10x32xf32> to vector<10xf32>
    %149 = vector.shape_cast %148 : vector<10xf32> to vector<10x1xf32>
    %cst_64 = arith.constant 3.200000e+01 : f32
    %150 = vector.broadcast %cst_64 : f32 to vector<10x1xf32>
    %151 = arith.divf %149, %150 : vector<10x1xf32>
    %152 = vector.broadcast %144 : vector<10x1xf32> to vector<10x32xf32>
    %153 = arith.subf %136, %152 : vector<10x32xf32>
    %cst_65 = arith.constant 9.99999996E-13 : f32
    %154 = vector.broadcast %cst_65 : f32 to vector<10x1xf32>
    %155 = arith.addf %151, %154 : vector<10x1xf32>
    %156 = math.rsqrt %155 : vector<10x1xf32>
    %157 = vector.broadcast %156 : vector<10x1xf32> to vector<10x32xf32>
    %158 = arith.mulf %153, %157 : vector<10x32xf32>
    %159 = vector.broadcast %138 : vector<1x32xf32> to vector<10x32xf32>
    %160 = arith.mulf %158, %159 : vector<10x32xf32>
    %161 = vector.broadcast %140 : vector<1x32xf32> to vector<10x32xf32>
    %162 = arith.addf %160, %161 : vector<10x32xf32>
    %163 = arith.truncf %162 : vector<10x32xf32> to vector<10x32xbf16>
    %c0_66 = arith.constant 0 : index
    %c0_67 = arith.constant 0 : index
    %c0_68 = arith.constant 0 : index
    %164 = vector.load %arg12[%c0_66, %c0_67, %c0_68] : memref<2x32x64xbf16, #tpu.memory_space<vmem>>, vector<1x32x64xbf16>
    %165 = vector.shape_cast %164 : vector<1x32x64xbf16> to vector<32x64xbf16>
    %cst_69 = arith.constant dense<0.000000e+00> : vector<10x64xf32>
    %166 = tpu.matmul %163, %165, %cst_69 {dimension_numbers = #tpu.dot_dimension_numbers<[1], [0], [0], [1], [0, 0, 1, 1], [], []>} : vector<10x32xbf16>, vector<32x64xbf16>, vector<10x64xf32> -> vector<10x64xf32>
    %c0_70 = arith.constant 0 : index
    %c0_71 = arith.constant 0 : index
    %c0_72 = arith.constant 0 : index
    %167 = vector.load %arg13[%c0_70, %c0_71, %c0_72] : memref<2x1x64xf32, #tpu.memory_space<vmem>>, vector<1x1x64xf32>
    %168 = vector.shape_cast %167 : vector<1x1x64xf32> to vector<1x64xf32>
    %169 = vector.broadcast %168 : vector<1x64xf32> to vector<10x64xf32>
    %170 = arith.addf %166, %169 : vector<10x64xf32>
    %cst_73 = arith.constant 5.000000e-01 : f32
    %171 = vector.broadcast %cst_73 : f32 to vector<10x64xf32>
    %172 = arith.mulf %171, %170 : vector<10x64xf32>
    %cst_74 = arith.constant 4.471500e-02 : f32
    %173 = vector.broadcast %cst_74 : f32 to vector<10x64xf32>
    %174 = arith.mulf %173, %170 : vector<10x64xf32>
    %175 = arith.mulf %174, %170 : vector<10x64xf32>
    %176 = arith.mulf %175, %170 : vector<10x64xf32>
    %177 = arith.addf %170, %176 : vector<10x64xf32>
    %cst_75 = arith.constant 0.797884583 : f32
    %178 = vector.broadcast %cst_75 : f32 to vector<10x64xf32>
    %179 = arith.mulf %178, %177 : vector<10x64xf32>
    %180 = math.tanh %179 : vector<10x64xf32>
    %cst_76 = arith.constant 1.000000e+00 : f32
    %181 = vector.broadcast %cst_76 : f32 to vector<10x64xf32>
    %182 = arith.addf %181, %180 : vector<10x64xf32>
    %183 = arith.mulf %172, %182 : vector<10x64xf32>
    %184 = arith.truncf %183 : vector<10x64xf32> to vector<10x64xbf16>
    %c0_77 = arith.constant 0 : index
    %c0_78 = arith.constant 0 : index
    %c0_79 = arith.constant 0 : index
    %185 = vector.load %arg14[%c0_77, %c0_78, %c0_79] : memref<2x64x32xbf16, #tpu.memory_space<vmem>>, vector<1x64x32xbf16>
    %186 = vector.shape_cast %185 : vector<1x64x32xbf16> to vector<64x32xbf16>
    %cst_80 = arith.constant dense<0.000000e+00> : vector<10x32xf32>
    %187 = tpu.matmul %184, %186, %cst_80 {dimension_numbers = #tpu.dot_dimension_numbers<[1], [0], [0], [1], [0, 0, 1, 1], [], []>} : vector<10x64xbf16>, vector<64x32xbf16>, vector<10x32xf32> -> vector<10x32xf32>
    %188 = arith.addf %136, %187 : vector<10x32xf32>
    %c0_81 = arith.constant 0 : index
    %c0_82 = arith.constant 0 : index
    %c0_83 = arith.constant 0 : index
    %189 = vector.load %arg15[%c0_81, %c0_82, %c0_83] : memref<2x1x32xf32, #tpu.memory_space<vmem>>, vector<1x1x32xf32>
    %190 = vector.shape_cast %189 : vector<1x1x32xf32> to vector<1x32xf32>
    %191 = vector.broadcast %190 : vector<1x32xf32> to vector<10x32xf32>
    %192 = arith.addf %188, %191 : vector<10x32xf32>
    %c1 = arith.constant 1 : index
    %c0_84 = arith.constant 0 : index
    %c0_85 = arith.constant 0 : index
    %193 = vector.load %arg4[%c1, %c0_84, %c0_85] : memref<2x1x32xf32, #tpu.memory_space<vmem>>, vector<1x1x32xf32>
    %194 = vector.shape_cast %193 : vector<1x1x32xf32> to vector<1x32xf32>
    %c1_86 = arith.constant 1 : index
    %c0_87 = arith.constant 0 : index
    %c0_88 = arith.constant 0 : index
    %195 = vector.load %arg5[%c1_86, %c0_87, %c0_88] : memref<2x1x32xf32, #tpu.memory_space<vmem>>, vector<1x1x32xf32>
    %196 = vector.shape_cast %195 : vector<1x1x32xf32> to vector<1x32xf32>
    %cst_89 = arith.constant dense<0.000000e+00> : vector<10xf32>
    %197 = vector.multi_reduction <add>, %192, %cst_89 [1] : vector<10x32xf32> to vector<10xf32>
    %198 = vector.shape_cast %197 : vector<10xf32> to vector<10x1xf32>
    %cst_90 = arith.constant 3.200000e+01 : f32
    %199 = vector.broadcast %cst_90 : f32 to vector<10x1xf32>
    %200 = arith.divf %198, %199 : vector<10x1xf32>
    %201 = vector.broadcast %200 : vector<10x1xf32> to vector<10x32xf32>
    %202 = arith.subf %192, %201 : vector<10x32xf32>
    %203 = arith.mulf %202, %202 : vector<10x32xf32>
    %cst_91 = arith.constant dense<0.000000e+00> : vector<10xf32>
    %204 = vector.multi_reduction <add>, %203, %cst_91 [1] : vector<10x32xf32> to vector<10xf32>
    %205 = vector.shape_cast %204 : vector<10xf32> to vector<10x1xf32>
    %cst_92 = arith.constant 3.200000e+01 : f32
    %206 = vector.broadcast %cst_92 : f32 to vector<10x1xf32>
    %207 = arith.divf %205, %206 : vector<10x1xf32>
    %208 = vector.broadcast %200 : vector<10x1xf32> to vector<10x32xf32>
    %209 = arith.subf %192, %208 : vector<10x32xf32>
    %cst_93 = arith.constant 9.99999996E-13 : f32
    %210 = vector.broadcast %cst_93 : f32 to vector<10x1xf32>
    %211 = arith.addf %207, %210 : vector<10x1xf32>
    %212 = math.rsqrt %211 : vector<10x1xf32>
    %213 = vector.broadcast %212 : vector<10x1xf32> to vector<10x32xf32>
    %214 = arith.mulf %209, %213 : vector<10x32xf32>
    %215 = vector.broadcast %194 : vector<1x32xf32> to vector<10x32xf32>
    %216 = arith.mulf %214, %215 : vector<10x32xf32>
    %217 = vector.broadcast %196 : vector<1x32xf32> to vector<10x32xf32>
    %218 = arith.addf %216, %217 : vector<10x32xf32>
    %219 = arith.truncf %218 : vector<10x32xf32> to vector<10x32xbf16>
    %c1_94 = arith.constant 1 : index
    %c0_95 = arith.constant 0 : index
    %c0_96 = arith.constant 0 : index
    %220 = vector.load %arg6[%c1_94, %c0_95, %c0_96] : memref<2x32x96xbf16, #tpu.memory_space<vmem>>, vector<1x32x96xbf16>
    %221 = vector.shape_cast %220 : vector<1x32x96xbf16> to vector<32x96xbf16>
    %cst_97 = arith.constant dense<0.000000e+00> : vector<10x96xf32>
    %222 = tpu.matmul %219, %221, %cst_97 {dimension_numbers = #tpu.dot_dimension_numbers<[1], [0], [0], [1], [0, 0, 1, 1], [], []>} : vector<10x32xbf16>, vector<32x96xbf16>, vector<10x96xf32> -> vector<10x96xf32>
    %c1_98 = arith.constant 1 : index
    %c0_99 = arith.constant 0 : index
    %c0_100 = arith.constant 0 : index
    %223 = vector.load %arg7[%c1_98, %c0_99, %c0_100] : memref<2x1x96xf32, #tpu.memory_space<vmem>>, vector<1x1x96xf32>
    %224 = vector.shape_cast %223 : vector<1x1x96xf32> to vector<1x96xf32>
    %225 = vector.broadcast %224 : vector<1x96xf32> to vector<10x96xf32>
    %226 = arith.addf %222, %225 : vector<10x96xf32>
    %227 = vector.extract_strided_slice %226 {offsets = [0, 0], sizes = [10, 8], strides = [1, 1]} : vector<10x96xf32> to vector<10x8xf32>
    %228 = arith.truncf %227 : vector<10x8xf32> to vector<10x8xbf16>
    %229 = vector.extract_strided_slice %226 {offsets = [0, 32], sizes = [10, 8], strides = [1, 1]} : vector<10x96xf32> to vector<10x8xf32>
    %230 = arith.truncf %229 : vector<10x8xf32> to vector<10x8xbf16>
    %231 = vector.extract_strided_slice %226 {offsets = [0, 64], sizes = [10, 8], strides = [1, 1]} : vector<10x96xf32> to vector<10x8xf32>
    %232 = arith.truncf %231 : vector<10x8xf32> to vector<10x8xbf16>
    %cst_101 = arith.constant dense<0.000000e+00> : vector<10x10xf32>
    %233 = tpu.matmul %228, %230, %cst_101 {dimension_numbers = #tpu.dot_dimension_numbers<[1], [1], [0], [0], [0, 0, 1, 0], [], []>} : vector<10x8xbf16>, vector<10x8xbf16>, vector<10x10xf32> -> vector<10x10xf32>
    %234 = arith.addf %233, %5 : vector<10x10xf32>
    %cst_102 = arith.constant dense<0xFF800000> : vector<10xf32>
    %235 = vector.multi_reduction <maximumf>, %234, %cst_102 [1] : vector<10x10xf32> to vector<10xf32>
    %236 = vector.shape_cast %235 : vector<10xf32> to vector<10x1xf32>
    %237 = vector.broadcast %236 : vector<10x1xf32> to vector<10x10xf32>
    %238 = arith.subf %234, %237 : vector<10x10xf32>
    %239 = math.exp %238 : vector<10x10xf32>
    %cst_103 = arith.constant dense<0.000000e+00> : vector<10xf32>
    %240 = vector.multi_reduction <add>, %239, %cst_103 [1] : vector<10x10xf32> to vector<10xf32>
    %241 = vector.shape_cast %240 : vector<10xf32> to vector<10x1xf32>
    %242 = tpu.reciprocal %241 {approx = true} : vector<10x1xf32> -> vector<10x1xf32>
    %243 = vector.broadcast %242 : vector<10x1xf32> to vector<10x10xf32>
    %244 = arith.mulf %239, %243 : vector<10x10xf32>
    %245 = arith.truncf %244 : vector<10x10xf32> to vector<10x10xbf16>
    %cst_104 = arith.constant dense<0.000000e+00> : vector<10x8xf32>
    %246 = tpu.matmul %245, %232, %cst_104 {dimension_numbers = #tpu.dot_dimension_numbers<[1], [0], [0], [1], [0, 0, 1, 1], [], []>} : vector<10x10xbf16>, vector<10x8xbf16>, vector<10x8xf32> -> vector<10x8xf32>
    %247 = arith.truncf %246 : vector<10x8xf32> to vector<10x8xbf16>
    %c0_105 = arith.constant 0 : index
    %c0_106 = arith.constant 0 : index
    %248 = vector.load %arg21[%c0_105, %c0_106] : memref<10x32xbf16, #tpu.memory_space<vmem>>, vector<10x8xbf16>
    tpu.vector_store %arg21[%c0_105, %c0_106], %247 {strides = array<i32>} : memref<10x32xbf16, #tpu.memory_space<vmem>>, vector<10x8xbf16>,
    %249 = vector.extract_strided_slice %226 {offsets = [0, 8], sizes = [10, 8], strides = [1, 1]} : vector<10x96xf32> to vector<10x8xf32>
    %250 = arith.truncf %249 : vector<10x8xf32> to vector<10x8xbf16>
    %251 = vector.extract_strided_slice %226 {offsets = [0, 40], sizes = [10, 8], strides = [1, 1]} : vector<10x96xf32> to vector<10x8xf32>
    %252 = arith.truncf %251 : vector<10x8xf32> to vector<10x8xbf16>
    %253 = vector.extract_strided_slice %226 {offsets = [0, 72], sizes = [10, 8], strides = [1, 1]} : vector<10x96xf32> to vector<10x8xf32>
    %254 = arith.truncf %253 : vector<10x8xf32> to vector<10x8xbf16>
    %cst_107 = arith.constant dense<0.000000e+00> : vector<10x10xf32>
    %255 = tpu.matmul %250, %252, %cst_107 {dimension_numbers = #tpu.dot_dimension_numbers<[1], [1], [0], [0], [0, 0, 1, 0], [], []>} : vector<10x8xbf16>, vector<10x8xbf16>, vector<10x10xf32> -> vector<10x10xf32>
    %256 = arith.addf %255, %5 : vector<10x10xf32>
    %cst_108 = arith.constant dense<0xFF800000> : vector<10xf32>
    %257 = vector.multi_reduction <maximumf>, %256, %cst_108 [1] : vector<10x10xf32> to vector<10xf32>
    %258 = vector.shape_cast %257 : vector<10xf32> to vector<10x1xf32>
    %259 = vector.broadcast %258 : vector<10x1xf32> to vector<10x10xf32>
    %260 = arith.subf %256, %259 : vector<10x10xf32>
    %261 = math.exp %260 : vector<10x10xf32>
    %cst_109 = arith.constant dense<0.000000e+00> : vector<10xf32>
    %262 = vector.multi_reduction <add>, %261, %cst_109 [1] : vector<10x10xf32> to vector<10xf32>
    %263 = vector.shape_cast %262 : vector<10xf32> to vector<10x1xf32>
    %264 = tpu.reciprocal %263 {approx = true} : vector<10x1xf32> -> vector<10x1xf32>
    %265 = vector.broadcast %264 : vector<10x1xf32> to vector<10x10xf32>
    %266 = arith.mulf %261, %265 : vector<10x10xf32>
    %267 = arith.truncf %266 : vector<10x10xf32> to vector<10x10xbf16>
    %cst_110 = arith.constant dense<0.000000e+00> : vector<10x8xf32>
    %268 = tpu.matmul %267, %254, %cst_110 {dimension_numbers = #tpu.dot_dimension_numbers<[1], [0], [0], [1], [0, 0, 1, 1], [], []>} : vector<10x10xbf16>, vector<10x8xbf16>, vector<10x8xf32> -> vector<10x8xf32>
    %269 = arith.truncf %268 : vector<10x8xf32> to vector<10x8xbf16>
    %c0_111 = arith.constant 0 : index
    %c8_112 = arith.constant 8 : index
    %270 = vector.load %arg21[%c0_111, %c8_112] : memref<10x32xbf16, #tpu.memory_space<vmem>>, vector<10x8xbf16>
    tpu.vector_store %arg21[%c0_111, %c8_112], %269 {strides = array<i32>} : memref<10x32xbf16, #tpu.memory_space<vmem>>, vector<10x8xbf16>,
    %271 = vector.extract_strided_slice %226 {offsets = [0, 16], sizes = [10, 8], strides = [1, 1]} : vector<10x96xf32> to vector<10x8xf32>
    %272 = arith.truncf %271 : vector<10x8xf32> to vector<10x8xbf16>
    %273 = vector.extract_strided_slice %226 {offsets = [0, 48], sizes = [10, 8], strides = [1, 1]} : vector<10x96xf32> to vector<10x8xf32>
    %274 = arith.truncf %273 : vector<10x8xf32> to vector<10x8xbf16>
    %275 = vector.extract_strided_slice %226 {offsets = [0, 80], sizes = [10, 8], strides = [1, 1]} : vector<10x96xf32> to vector<10x8xf32>
    %276 = arith.truncf %275 : vector<10x8xf32> to vector<10x8xbf16>
    %cst_113 = arith.constant dense<0.000000e+00> : vector<10x10xf32>
    %277 = tpu.matmul %272, %274, %cst_113 {dimension_numbers = #tpu.dot_dimension_numbers<[1], [1], [0], [0], [0, 0, 1, 0], [], []>} : vector<10x8xbf16>, vector<10x8xbf16>, vector<10x10xf32> -> vector<10x10xf32>
    %278 = arith.addf %277, %5 : vector<10x10xf32>
    %cst_114 = arith.constant dense<0xFF800000> : vector<10xf32>
    %279 = vector.multi_reduction <maximumf>, %278, %cst_114 [1] : vector<10x10xf32> to vector<10xf32>
    %280 = vector.shape_cast %279 : vector<10xf32> to vector<10x1xf32>
    %281 = vector.broadcast %280 : vector<10x1xf32> to vector<10x10xf32>
    %282 = arith.subf %278, %281 : vector<10x10xf32>
    %283 = math.exp %282 : vector<10x10xf32>
    %cst_115 = arith.constant dense<0.000000e+00> : vector<10xf32>
    %284 = vector.multi_reduction <add>, %283, %cst_115 [1] : vector<10x10xf32> to vector<10xf32>
    %285 = vector.shape_cast %284 : vector<10xf32> to vector<10x1xf32>
    %286 = tpu.reciprocal %285 {approx = true} : vector<10x1xf32> -> vector<10x1xf32>
    %287 = vector.broadcast %286 : vector<10x1xf32> to vector<10x10xf32>
    %288 = arith.mulf %283, %287 : vector<10x10xf32>
    %289 = arith.truncf %288 : vector<10x10xf32> to vector<10x10xbf16>
    %cst_116 = arith.constant dense<0.000000e+00> : vector<10x8xf32>
    %290 = tpu.matmul %289, %276, %cst_116 {dimension_numbers = #tpu.dot_dimension_numbers<[1], [0], [0], [1], [0, 0, 1, 1], [], []>} : vector<10x10xbf16>, vector<10x8xbf16>, vector<10x8xf32> -> vector<10x8xf32>
    %291 = arith.truncf %290 : vector<10x8xf32> to vector<10x8xbf16>
    %c0_117 = arith.constant 0 : index
    %c16_118 = arith.constant 16 : index
    %292 = vector.load %arg21[%c0_117, %c16_118] : memref<10x32xbf16, #tpu.memory_space<vmem>>, vector<10x8xbf16>
    tpu.vector_store %arg21[%c0_117, %c16_118], %291 {strides = array<i32>} : memref<10x32xbf16, #tpu.memory_space<vmem>>, vector<10x8xbf16>,
    %293 = vector.extract_strided_slice %226 {offsets = [0, 24], sizes = [10, 8], strides = [1, 1]} : vector<10x96xf32> to vector<10x8xf32>
    %294 = arith.truncf %293 : vector<10x8xf32> to vector<10x8xbf16>
    %295 = vector.extract_strided_slice %226 {offsets = [0, 56], sizes = [10, 8], strides = [1, 1]} : vector<10x96xf32> to vector<10x8xf32>
    %296 = arith.truncf %295 : vector<10x8xf32> to vector<10x8xbf16>
    %297 = vector.extract_strided_slice %226 {offsets = [0, 88], sizes = [10, 8], strides = [1, 1]} : vector<10x96xf32> to vector<10x8xf32>
    %298 = arith.truncf %297 : vector<10x8xf32> to vector<10x8xbf16>
    %cst_119 = arith.constant dense<0.000000e+00> : vector<10x10xf32>
    %299 = tpu.matmul %294, %296, %cst_119 {dimension_numbers = #tpu.dot_dimension_numbers<[1], [1], [0], [0], [0, 0, 1, 0], [], []>} : vector<10x8xbf16>, vector<10x8xbf16>, vector<10x10xf32> -> vector<10x10xf32>
    %300 = arith.addf %299, %5 : vector<10x10xf32>
    %cst_120 = arith.constant dense<0xFF800000> : vector<10xf32>
    %301 = vector.multi_reduction <maximumf>, %300, %cst_120 [1] : vector<10x10xf32> to vector<10xf32>
    %302 = vector.shape_cast %301 : vector<10xf32> to vector<10x1xf32>
    %303 = vector.broadcast %302 : vector<10x1xf32> to vector<10x10xf32>
    %304 = arith.subf %300, %303 : vector<10x10xf32>
    %305 = math.exp %304 : vector<10x10xf32>
    %cst_121 = arith.constant dense<0.000000e+00> : vector<10xf32>
    %306 = vector.multi_reduction <add>, %305, %cst_121 [1] : vector<10x10xf32> to vector<10xf32>
    %307 = vector.shape_cast %306 : vector<10xf32> to vector<10x1xf32>
    %308 = tpu.reciprocal %307 {approx = true} : vector<10x1xf32> -> vector<10x1xf32>
    %309 = vector.broadcast %308 : vector<10x1xf32> to vector<10x10xf32>
    %310 = arith.mulf %305, %309 : vector<10x10xf32>
    %311 = arith.truncf %310 : vector<10x10xf32> to vector<10x10xbf16>
    %cst_122 = arith.constant dense<0.000000e+00> : vector<10x8xf32>
    %312 = tpu.matmul %311, %298, %cst_122 {dimension_numbers = #tpu.dot_dimension_numbers<[1], [0], [0], [1], [0, 0, 1, 1], [], []>} : vector<10x10xbf16>, vector<10x8xbf16>, vector<10x8xf32> -> vector<10x8xf32>
    %313 = arith.truncf %312 : vector<10x8xf32> to vector<10x8xbf16>
    %c0_123 = arith.constant 0 : index
    %c24_124 = arith.constant 24 : index
    %314 = vector.load %arg21[%c0_123, %c24_124] : memref<10x32xbf16, #tpu.memory_space<vmem>>, vector<10x8xbf16>
    tpu.vector_store %arg21[%c0_123, %c24_124], %313 {strides = array<i32>} : memref<10x32xbf16, #tpu.memory_space<vmem>>, vector<10x8xbf16>,
    %c0_125 = arith.constant 0 : index
    %c0_126 = arith.constant 0 : index
    %315 = vector.load %arg21[%c0_125, %c0_126] : memref<10x32xbf16, #tpu.memory_space<vmem>>, vector<10x32xbf16>
    %c1_127 = arith.constant 1 : index
    %c0_128 = arith.constant 0 : index
    %c0_129 = arith.constant 0 : index
    %316 = vector.load %arg8[%c1_127, %c0_128, %c0_129] : memref<2x32x32xbf16, #tpu.memory_space<vmem>>, vector<1x32x32xbf16>
    %317 = vector.shape_cast %316 : vector<1x32x32xbf16> to vector<32x32xbf16>
    %cst_130 = arith.constant dense<0.000000e+00> : vector<10x32xf32>
    %318 = tpu.matmul %315, %317, %cst_130 {dimension_numbers = #tpu.dot_dimension_numbers<[1], [0], [0], [1], [0, 0, 1, 1], [], []>} : vector<10x32xbf16>, vector<32x32xbf16>, vector<10x32xf32> -> vector<10x32xf32>
    %319 = arith.addf %192, %318 : vector<10x32xf32>
    %c1_131 = arith.constant 1 : index
    %c0_132 = arith.constant 0 : index
    %c0_133 = arith.constant 0 : index
    %320 = vector.load %arg9[%c1_131, %c0_132, %c0_133] : memref<2x1x32xf32, #tpu.memory_space<vmem>>, vector<1x1x32xf32>
    %321 = vector.shape_cast %320 : vector<1x1x32xf32> to vector<1x32xf32>
    %322 = vector.broadcast %321 : vector<1x32xf32> to vector<10x32xf32>
    %323 = arith.addf %319, %322 : vector<10x32xf32>
    %c1_134 = arith.constant 1 : index
    %c0_135 = arith.constant 0 : index
    %c0_136 = arith.constant 0 : index
    %324 = vector.load %arg10[%c1_134, %c0_135, %c0_136] : memref<2x1x32xf32, #tpu.memory_space<vmem>>, vector<1x1x32xf32>
    %325 = vector.shape_cast %324 : vector<1x1x32xf32> to vector<1x32xf32>
    %c1_137 = arith.constant 1 : index
    %c0_138 = arith.constant 0 : index
    %c0_139 = arith.constant 0 : index
    %326 = vector.load %arg11[%c1_137, %c0_138, %c0_139] : memref<2x1x32xf32, #tpu.memory_space<vmem>>, vector<1x1x32xf32>
    %327 = vector.shape_cast %326 : vector<1x1x32xf32> to vector<1x32xf32>
    %cst_140 = arith.constant dense<0.000000e+00> : vector<10xf32>
    %328 = vector.multi_reduction <add>, %323, %cst_140 [1] : vector<10x32xf32> to vector<10xf32>
    %329 = vector.shape_cast %328 : vector<10xf32> to vector<10x1xf32>
    %cst_141 = arith.constant 3.200000e+01 : f32
    %330 = vector.broadcast %cst_141 : f32 to vector<10x1xf32>
    %331 = arith.divf %329, %330 : vector<10x1xf32>
    %332 = vector.broadcast %331 : vector<10x1xf32> to vector<10x32xf32>
    %333 = arith.subf %323, %332 : vector<10x32xf32>
    %334 = arith.mulf %333, %333 : vector<10x32xf32>
    %cst_142 = arith.constant dense<0.000000e+00> : vector<10xf32>
    %335 = vector.multi_reduction <add>, %334, %cst_142 [1] : vector<10x32xf32> to vector<10xf32>
    %336 = vector.shape_cast %335 : vector<10xf32> to vector<10x1xf32>
    %cst_143 = arith.constant 3.200000e+01 : f32
    %337 = vector.broadcast %cst_143 : f32 to vector<10x1xf32>
    %338 = arith.divf %336, %337 : vector<10x1xf32>
    %339 = vector.broadcast %331 : vector<10x1xf32> to vector<10x32xf32>
    %340 = arith.subf %323, %339 : vector<10x32xf32>
    %cst_144 = arith.constant 9.99999996E-13 : f32
    %341 = vector.broadcast %cst_144 : f32 to vector<10x1xf32>
    %342 = arith.addf %338, %341 : vector<10x1xf32>
    %343 = math.rsqrt %342 : vector<10x1xf32>
    %344 = vector.broadcast %343 : vector<10x1xf32> to vector<10x32xf32>
    %345 = arith.mulf %340, %344 : vector<10x32xf32>
    %346 = vector.broadcast %325 : vector<1x32xf32> to vector<10x32xf32>
    %347 = arith.mulf %345, %346 : vector<10x32xf32>
    %348 = vector.broadcast %327 : vector<1x32xf32> to vector<10x32xf32>
    %349 = arith.addf %347, %348 : vector<10x32xf32>
    %350 = arith.truncf %349 : vector<10x32xf32> to vector<10x32xbf16>
    %c1_145 = arith.constant 1 : index
    %c0_146 = arith.constant 0 : index
    %c0_147 = arith.constant 0 : index
    %351 = vector.load %arg12[%c1_145, %c0_146, %c0_147] : memref<2x32x64xbf16, #tpu.memory_space<vmem>>, vector<1x32x64xbf16>
    %352 = vector.shape_cast %351 : vector<1x32x64xbf16> to vector<32x64xbf16>
    %cst_148 = arith.constant dense<0.000000e+00> : vector<10x64xf32>
    %353 = tpu.matmul %350, %352, %cst_148 {dimension_numbers = #tpu.dot_dimension_numbers<[1], [0], [0], [1], [0, 0, 1, 1], [], []>} : vector<10x32xbf16>, vector<32x64xbf16>, vector<10x64xf32> -> vector<10x64xf32>
    %c1_149 = arith.constant 1 : index
    %c0_150 = arith.constant 0 : index
    %c0_151 = arith.constant 0 : index
    %354 = vector.load %arg13[%c1_149, %c0_150, %c0_151] : memref<2x1x64xf32, #tpu.memory_space<vmem>>, vector<1x1x64xf32>
    %355 = vector.shape_cast %354 : vector<1x1x64xf32> to vector<1x64xf32>
    %356 = vector.broadcast %355 : vector<1x64xf32> to vector<10x64xf32>
    %357 = arith.addf %353, %356 : vector<10x64xf32>
    %cst_152 = arith.constant 5.000000e-01 : f32
    %358 = vector.broadcast %cst_152 : f32 to vector<10x64xf32>
    %359 = arith.mulf %358, %357 : vector<10x64xf32>
    %cst_153 = arith.constant 4.471500e-02 : f32
    %360 = vector.broadcast %cst_153 : f32 to vector<10x64xf32>
    %361 = arith.mulf %360, %357 : vector<10x64xf32>
    %362 = arith.mulf %361, %357 : vector<10x64xf32>
    %363 = arith.mulf %362, %357 : vector<10x64xf32>
    %364 = arith.addf %357, %363 : vector<10x64xf32>
    %cst_154 = arith.constant 0.797884583 : f32
    %365 = vector.broadcast %cst_154 : f32 to vector<10x64xf32>
    %366 = arith.mulf %365, %364 : vector<10x64xf32>
    %367 = math.tanh %366 : vector<10x64xf32>
    %cst_155 = arith.constant 1.000000e+00 : f32
    %368 = vector.broadcast %cst_155 : f32 to vector<10x64xf32>
    %369 = arith.addf %368, %367 : vector<10x64xf32>
    %370 = arith.mulf %359, %369 : vector<10x64xf32>
    %371 = arith.truncf %370 : vector<10x64xf32> to vector<10x64xbf16>
    %c1_156 = arith.constant 1 : index
    %c0_157 = arith.constant 0 : index
    %c0_158 = arith.constant 0 : index
    %372 = vector.load %arg14[%c1_156, %c0_157, %c0_158] : memref<2x64x32xbf16, #tpu.memory_space<vmem>>, vector<1x64x32xbf16>
    %373 = vector.shape_cast %372 : vector<1x64x32xbf16> to vector<64x32xbf16>
    %cst_159 = arith.constant dense<0.000000e+00> : vector<10x32xf32>
    %374 = tpu.matmul %371, %373, %cst_159 {dimension_numbers = #tpu.dot_dimension_numbers<[1], [0], [0], [1], [0, 0, 1, 1], [], []>} : vector<10x64xbf16>, vector<64x32xbf16>, vector<10x32xf32> -> vector<10x32xf32>
    %375 = arith.addf %323, %374 : vector<10x32xf32>
    %c1_160 = arith.constant 1 : index
    %c0_161 = arith.constant 0 : index
    %c0_162 = arith.constant 0 : index
    %376 = vector.load %arg15[%c1_160, %c0_161, %c0_162] : memref<2x1x32xf32, #tpu.memory_space<vmem>>, vector<1x1x32xf32>
    %377 = vector.shape_cast %376 : vector<1x1x32xf32> to vector<1x32xf32>
    %378 = vector.broadcast %377 : vector<1x32xf32> to vector<10x32xf32>
    %379 = arith.addf %375, %378 : vector<10x32xf32>
    %c0_163 = arith.constant 0 : index
    %c0_164 = arith.constant 0 : index
    %380 = vector.load %arg16[%c0_163, %c0_164] : memref<1x32xf32, #tpu.memory_space<vmem>>, vector<1x32xf32>
    %c0_165 = arith.constant 0 : index
    %c0_166 = arith.constant 0 : index
    %381 = vector.load %arg17[%c0_165, %c0_166] : memref<1x32xf32, #tpu.memory_space<vmem>>, vector<1x32xf32>
    %cst_167 = arith.constant dense<0.000000e+00> : vector<10xf32>
    %382 = vector.multi_reduction <add>, %379, %cst_167 [1] : vector<10x32xf32> to vector<10xf32>
    %383 = vector.shape_cast %382 : vector<10xf32> to vector<10x1xf32>
    %cst_168 = arith.constant 3.200000e+01 : f32
    %384 = vector.broadcast %cst_168 : f32 to vector<10x1xf32>
    %385 = arith.divf %383, %384 : vector<10x1xf32>
    %386 = vector.broadcast %385 : vector<10x1xf32> to vector<10x32xf32>
    %387 = arith.subf %379, %386 : vector<10x32xf32>
    %388 = arith.mulf %387, %387 : vector<10x32xf32>
    %cst_169 = arith.constant dense<0.000000e+00> : vector<10xf32>
    %389 = vector.multi_reduction <add>, %388, %cst_169 [1] : vector<10x32xf32> to vector<10xf32>
    %390 = vector.shape_cast %389 : vector<10xf32> to vector<10x1xf32>
    %cst_170 = arith.constant 3.200000e+01 : f32
    %391 = vector.broadcast %cst_170 : f32 to vector<10x1xf32>
    %392 = arith.divf %390, %391 : vector<10x1xf32>
    %393 = vector.broadcast %385 : vector<10x1xf32> to vector<10x32xf32>
    %394 = arith.subf %379, %393 : vector<10x32xf32>
    %cst_171 = arith.constant 9.99999996E-13 : f32
    %395 = vector.broadcast %cst_171 : f32 to vector<10x1xf32>
    %396 = arith.addf %392, %395 : vector<10x1xf32>
    %397 = math.rsqrt %396 : vector<10x1xf32>
    %398 = vector.broadcast %397 : vector<10x1xf32> to vector<10x32xf32>
    %399 = arith.mulf %394, %398 : vector<10x32xf32>
    %400 = vector.broadcast %380 : vector<1x32xf32> to vector<10x32xf32>
    %401 = arith.mulf %399, %400 : vector<10x32xf32>
    %402 = vector.broadcast %381 : vector<1x32xf32> to vector<10x32xf32>
    %403 = arith.addf %401, %402 : vector<10x32xf32>
    %404 = arith.truncf %403 : vector<10x32xf32> to vector<10x32xbf16>
    %c0_172 = arith.constant 0 : index
    %c0_173 = arith.constant 0 : index
    %405 = vector.load %arg18[%c0_172, %c0_173] : memref<32x128xbf16, #tpu.memory_space<vmem>>, vector<32x128xbf16>
    %cst_174 = arith.constant dense<0.000000e+00> : vector<10x128xf32>
    %406 = tpu.matmul %404, %405, %cst_174 {dimension_numbers = #tpu.dot_dimension_numbers<[1], [0], [0], [1], [0, 0, 1, 1], [], []>} : vector<10x32xbf16>, vector<32x128xbf16>, vector<10x128xf32> -> vector<10x128xf32>
    %c0_175 = arith.constant 0 : index
    %c0_176 = arith.constant 0 : index
    %407 = vector.load %arg19[%c0_175, %c0_176] : memref<1x128xf32, #tpu.memory_space<vmem>>, vector<1x128xf32>
    %408 = vector.broadcast %407 : vector<1x128xf32> to vector<10x128xf32>
    %409 = arith.addf %406, %408 : vector<10x128xf32>
    %c0_177 = arith.constant 0 : index
    %c0_178 = arith.constant 0 : index
    %410 = vector.load %arg20[%c0_177, %c0_178] : memref<10x128xf32, #tpu.memory_space<vmem>>, vector<10x128xf32>
    tpu.vector_store %arg20[%c0_177, %c0_178], %409 {strides = array<i32>} : memref<10x128xf32, #tpu.memory_space<vmem>>, vector<10x128xf32>,
    return
  }
}

</mosaic_0001>

<bundles_post_ra>
// kernel: tile.9
= control target key start
LH: loop header
LB: loop body
LE: loop exit
PB: predicated region body
PF: predicated region fallthrough
CT: control target
= control target key end

     0   :  { %vm3_vm0 = vcmask 261120   ;;  %s34_s0 = inlined_call_operand.vmem [shape: f32[2,5,32], index: 0, kind: input, shape index: {}]   ;;  %s35_s1 = inlined_call_operand.vmem [shape: f32[10,32], index: 1, kind: output, shape index: {}]  }
   0x1   :  { %v2_v0 = vld [vmem:[%s34_s0] sm:$0x1f]   ;;  %v10_v1 = vld [vmem:[%s34_s0 + $0x8] sm:$0x1f]  }
   0x2   :  { %4 = vst.msk [vmem:[%s35_s1] sm:$0x1f] %vm3_vm0, %v2_v0   ;;  %11 = vst.msk [vmem:[%s35_s1 + $0x5] sm:$0x1f] %vm3_vm0, %v10_v1  }

// kernel: vit_forward.1
= control target key start
LH: loop header
LB: loop body
LE: loop exit
PB: predicated region body
PF: predicated region fallthrough
CT: control target
= control target key end

     0   :  { %v2805_v0 = vmov 0   ;;  %vm175_vm0 = vcmask 523264   ;;  %vm226_vm1 = vcmask 261120   ;;  %vm230_vm2 = vcmask 254976   ;;  %s2810_s26 = smov 120   ;;  %s3465_s30 = smov 64   ;;  %s3436_s3 = inlined_call_operand.vmem [shape: bf16[192,32], index: 3, kind: input, shape index: {}]   ;;  %s3437_s0 = inlined_call_operand.vmem [shape: bf16[10,192], index: 0, kind: input, shape index: {}]   ;;  %s3438_s1 = inlined_call_operand.vmem [shape: f32[10,32], index: 1, kind: input, shape index: {}]   ;;  %s3439_s6 = inlined_call_operand.vmem [shape: bf16[2,32,96], index: 6, kind: input, shape index: {}]   ;;  %s3440_s4 = inlined_call_operand.vmem [shape: f32[2,1,32], index: 4, kind: input, shape index: {}]   ;;  %s3441_s5 = inlined_call_operand.vmem [shape: f32[2,1,32], index: 5, kind: input, shape index: {}]   ;;  %s3442_s7 = inlined_call_operand.vmem [shape: f32[2,1,96], index: 7, kind: input, shape index: {}]   ;;  %s3443_s2 = inlined_call_operand.vmem [shape: f32[10,10], index: 2, kind: input, shape index: {}]   ;;  %s3444_s8 = inlined_call_operand.vmem [shape: bf16[2,32,32], index: 8, kind: input, shape index: {}]   ;;  %s3445_s9 = inlined_call_operand.vmem [shape: f32[2,1,32], index: 9, kind: input, shape index: {}]   ;;  %s3446_s12 = inlined_call_operand.vmem [shape: bf16[2,32,64], index: 12, kind: input, shape index: {}]   ;;  %s3447_s10 = inlined_call_operand.vmem [shape: f32[2,1,32], index: 10, kind: input, shape index: {}]   ;;  %s3448_s11 = inlined_call_operand.vmem [shape: f32[2,1,32], index: 11, kind: input, shape index: {}]   ;;  %s3449_s14 = inlined_call_operand.vmem [shape: bf16[2,64,32], index: 14, kind: input, shape index: {}]   ;;  %s3450_s13 = inlined_call_operand.vmem [shape: f32[2,1,64], index: 13, kind: input, shape index: {}]   ;;  %s3451_s15 = inlined_call_operand.vmem [shape: f32[2,1,32], index: 15, kind: input, shape index: {}]   ;;  %s3452_s18 = inlined_call_operand.vmem [shape: bf16[32,128], index: 18, kind: input, shape index: {}]   ;;  %s3453_s16 = inlined_call_operand.vmem [shape: f32[1,32], index: 16, kind: input, shape index: {}]   ;;  %s3454_s17 = inlined_call_operand.vmem [shape: f32[1,32], index: 17, kind: input, shape index: {}]   ;;  %s3455_s19 = inlined_call_operand.vmem [shape: f32[1,128], index: 19, kind: input, shape index: {}]   ;;  %s3456_s20 = inlined_call_operand.vmem [shape: f32[10,128], index: 20, kind: output, shape index: {}]  }
   0x1   :  { %3474 = sst [smem:[#allocation3_spill]] %s3436_s3  ;;  %179 = vmatprep.subr.bf16.mxu0 %v2805_v0  ;;  %v2806_v35 = vmov 0.0   ;;  %vm2807_vm3 = vmmov 0   ;;  %v2289_v50 = vld [vmem:[%s3441_s5] ss:$0 sm:$0xff]  ;;  %vm343_vm4 = vcmask 64512  }
   0x2   :  { %3475 = sst [smem:[#allocation4_spill]] %s3437_s0  ;;  %2479 = vmatprep.subr.bf16.mxu1 %v2806_v35  ;;  %2483 = vmatprep.mubr.msk.bf16.mxu1 %vm2807_vm3, %v2806_v35  ;;  %v2290_v56 = vld [vmem:[%s3442_s7] ss:$0 sm:$0xff]  ;;  %vm391_vm5 = vcmask 80896   ;;  %vm395_vm6 = vcmask 74752   ;;  %vm421_vm7 = vcmask 1044480  }
   0x3   :  { %3476 = sst [smem:[#allocation5_spill]] %s3438_s1  ;;  %vm474_vm8 = vcmask 60416   ;;  %vm476_vm9 = vcmask 57344   ;;  %s2812_s3 = smov 80   ;;  %vm613_vm10 = vcmask 126016   ;;  %vm615_vm11 = vcmask 122944  }
   0x4   :  { %3477 = sst [smem:[#allocation6_spill]] %s3439_s6  ;;  %s2809_s6 = smov 88   ;;  %vm752_vm12 = vcmask 191616   ;;  %vm754_vm13 = vcmask 188544   ;;  %vm891_vm14 = vcmask 257216   ;;  %vm893_vm15 = vcmask 254144  }
   0x5   :  { %3478 = sst [smem:[#allocation7_spill]] %s3440_s4  ;;  %s3473_s0 = smov 112  }
   0x6   :  { %s3479_s23 = sld [smem:[#allocation3_spill]]  ;;  %s2814_s22 = smov 72  }
   0x7   :  { %s3480_s29 = sld [smem:[#allocation4_spill]]  ;;  %s3471_s24 = smov 56  }
   0x8   :  { %s3481_s25 = sld [smem:[#allocation5_spill]]  ;;  %s3472_s1 = smov 104  }
   0x9   :  { %s3482_s27 = sld [smem:[#allocation6_spill]]  ;;  %s3464_s28 = smov 40  }
   0xa   :  { %s3483_s21 = sld [smem:[#allocation7_spill]]  ;;  %s3469_s4 = smov 16  }
   0xc   :  { %v2672_v1 = vld [vmem:[%s3479_s23 + $0x38] sm:$0xff]   ;;  %v2673_v2 = vld [vmem:[%s3479_s23 + $0x30] sm:$0xff]   ;;  %v2674_v3 = vld [vmem:[%s3479_s23 + $0x28] sm:$0xff]  }
   0xd   :  { %180 = vmatpush1.bf16.msra.mxu0 %v2672_v1  ;;  %v2675_v4 = vld [vmem:[%s3479_s23 + $0x20] sm:$0xff]   ;;  %v2676_v6 = vld [vmem:[%s3479_s23 + $0x18] sm:$0xff]   ;;  %v2677_v7 = vld [vmem:[%s3479_s23 + $0x10] sm:$0xff]  }
   0xe   :  { %181 = vmatprep.subr.bf16.mxu0 %v2805_v0  ;;  %v2686_v5 = vld [vmem:[%s3480_s29 + $0x4] ss:$8 sps:$4 sm:$0x1f]   ;;  %v2680_v10 = vld [vmem:[%s3479_s23 + $0x58] sm:$0xff]   ;;  %v2681_v11 = vld [vmem:[%s3479_s23 + $0x50] sm:$0xff]  }
   0xf   :  { %2287 = vmatprep.mubr.msk.bf16.mxu0 %vm175_vm0, %v2686_v5  ;;  %v2678_v8 = vld [vmem:[%s3479_s23 + $0x8] sm:$0xff]   ;;  %v2679_v9 = vld [vmem:[%s3479_s23] sm:$0xff]  }
  0x10   :  { %v2682_v12 = vld [vmem:[%s3479_s23 + $0x48] sm:$0xff]   ;;  %v2683_v13 = vld [vmem:[%s3479_s23 + $0x40] sm:$0xff]   ;;  %s3466_s23 = smov 48  }
  0x11   :  { %182 = vmatpush1.bf16.msra.mxu0 %v2673_v2  ;;  %v2684_v14 = vld [vmem:[%s3480_s29] ss:$8 sps:$4 sm:$0x1f]   ;;  %s3462_s29 = smov 8  }
  0x12   :  { %183 = vmatprep.subr.bf16.mxu0 %v2805_v0  ;;  %v66_v15 = vld [vmem:[%s3481_s25] sm:$0xff]  ;;  %v67_v19 = vld [vmem:[%s3481_s25 + $0x8] sm:$0x3]  ;;  %s2808_s25 = smov 96  }
  0x13   :  { %v2687_v36 = vld [vmem:[%s3482_s27 + $0x8] sm:$0xff]   ;;  %v2688_v37 = vld [vmem:[%s3482_s27] sm:$0xff]  }
  0x14   :  { %2480 = vmatpush3.bf16.msra.mxu1 %v2687_v36  ;;  %v2288_v46 = vld [vmem:[%s3483_s21] ss:$0 sm:$0xff]  ;;  %v3037_v5 = vld [vmem:[%s3443_s2 + $0x8] sm:$0x3] }
  0x15   :  { %184 = vmatpush1.bf16.msra.mxu0 %v2674_v3  ;;  %2481 = vmatprep.subr.bf16.mxu1 %v2806_v35  ;;  %v3031_v1 = vld [vmem:[%s3443_s2] sm:$0xff] }
  0x16   :  { %185 = vmatprep.subr.bf16.mxu0 %v2805_v0 }
  0x18   :  { %2482 = vmatpush3.bf16.msra.mxu1 %v2688_v37 }
  0x19   :  { %186 = vmatpush1.bf16.msra.mxu0 %v2675_v4  ;;  %2487 = vmatprep.subr.bf16.mxu1 %v2806_v35 }
  0x1a   :  { %187 = vmatprep.subr.bf16.mxu0 %v2805_v0 }
  0x1d   :  { %188 = vmatpush1.bf16.msra.mxu0 %v2676_v6 }
  0x1e   :  { %189 = vmatprep.subr.bf16.mxu0 %v2805_v0 }
  0x21   :  { %190 = vmatpush1.bf16.msra.mxu0 %v2677_v7 }
  0x22   :  { %191 = vmatprep.subr.bf16.mxu0 %v2805_v0 }
  0x25   :  { %192 = vmatpush1.bf16.msra.mxu0 %v2678_v8 }
  0x26   :  { %193 = vmatprep.subr.bf16.mxu0 %v2805_v0 }
  0x29   :  { %194 = vmatpush1.bf16.msra.mxu0 %v2679_v9 }
  0x2a   :  { %203 = vmatprep.subr.bf16.mxu0 %v2805_v0 }
  0x2d   :  { %204 = vmatpush2.bf16.msra.mxu0 %v2680_v10 }
  0x2e   :  { %205 = vmatprep.subr.bf16.mxu0 %v2805_v0 }
  0x31   :  { %206 = vmatpush2.bf16.msra.mxu0 %v2681_v11 }
  0x32   :  { %207 = vmatprep.subr.bf16.mxu0 %v2805_v0 }
  0x35   :  { %208 = vmatpush2.bf16.msra.mxu0 %v2682_v12 }
  0x36   :  { %209 = vmatprep.subr.bf16.mxu0 %v2805_v0 }
  0x39   :  { %210 = vmatpush2.bf16.msra.mxu0 %v2683_v13 }
  0x3a   :  { %2517 = vmatprep.subr.bf16.mxu0 %v2806_v35 }
  0x3c   :  { %212 = vmatmul.mubr.bf16.vlgmr.msra.gmra.mxu0 %v2684_v14 }
  0x3d   :  { %2519 = vmatprep.mubr.msk.bf16.mxu0 %vm2807_vm3, %v2806_v35 }
  0xfc   :  { %v213_v16 = vpop.f32.mrf.mxu0 }
  0xfd   :  { %v2973_v17 = vadd.f32 %v213_v16, %v66_v15 }
  0xfe   :  { %v215_v18 = vpop.f32.mrf.mxu0 }
  0xff   :  { %v227_v20 = vsel %vm226_vm1, %v2973_v17, 0.0 }
 0x100   :  { %228 = vadd.xlane.f32.xlu0 %v227_v20  ;;  %v216_v21 = vpop.f32.mrf.mxu0 }
 0x101   :  { %v2980_v22 = vadd.f32 %v216_v21, %v67_v19 }
 0x102   :  { %v218_v23 = vpop.f32.mrf.mxu0 }
 0x103   :  { %v231_v24 = vsel %vm230_vm2, %v2980_v22, 0.0 }
 0x104   :  { %232 = vadd.xlane.f32.xlu0 %v231_v24 }
 0x189   :  { %v229_v25 = vpop.xlane.xlu0 %228 }
 0x18a   :  { %v235_v26 = vmul.f32 0.03125, %v229_v25 }
 0x18c   :  { %v237_v27 = vsub.f32 %v2973_v17, %v235_v26 }
 0x18d   :  { %v233_v28 = vpop.xlane.xlu0 %232 }
 0x18e   :  { %v236_v29 = vmul.f32 0.03125, %v233_v28  ;;  %v239_v30 = vmul.f32 %v237_v27, %v237_v27 }
 0x190   :  { %v238_v31 = vsub.f32 %v2980_v22, %v236_v29  ;;  %v241_v32 = vsel %vm226_vm1, %v239_v30, 0.0 }
 0x191   :  { %242 = vadd.xlane.f32.xlu1 %v241_v32 }
 0x192   :  { %v240_v33 = vmul.f32 %v238_v31, %v238_v31 }
 0x194   :  { %v244_v34 = vsel %vm230_vm2, %v240_v33, 0.0 }
 0x195   :  { %245 = vadd.xlane.f32.xlu1 %v244_v34 }
 0x21a   :  { %v243_v38 = vpop.xlane.xlu1 %242 }
 0x21b   :  { %v247_v39 = vmul.f32 0.03125, %v243_v38 }
 0x21d   :  { %v249_v40 = vadd.f32 1e-12, %v247_v39 }
 0x21e   :  { %v246_v41 = vpop.xlane.xlu1 %245 }
 0x21f   :  { %2711 = vrsqrt.f32 %v249_v40  ;;  %v248_v42 = vmul.f32 0.03125, %v246_v41 }
 0x221   :  { %v250_v43 = vadd.f32 1e-12, %v248_v42 }
 0x223   :  { %2713 = vrsqrt.f32 %v250_v43 }
 0x22c   :  { %v2712_v44 = vpop.eup %2711 }
 0x22d   :  { %v253_v45 = vmul.f32 %v2712_v44, %v237_v27 }
 0x22f   :  { %v261_v49 = vmul.f32 %v2288_v46, %v253_v45 }
 0x230   :  { %v2714_v47 = vpop.eup %2713 }
 0x231   :  { %v254_v48 = vmul.f32 %v2714_v47, %v238_v31  ;;  %v269_v52 = vadd.f32 %v2289_v50, %v261_v49 }
 0x233   :  { %v262_v51 = vmul.f32 %v2288_v46, %v254_v48 }
 0x235   :  { %v270_v53 = vadd.f32 %v2289_v50, %v262_v51 }
 0x237   :  { %v271_v54 = vpack.c.bf16 %v270_v53, %v269_v52 }
 0x239   :  { %2484 = vmatmul.mubr.msk.bf16.vlgmr.msra.gmra.mxu1 %vm226_vm1, %v271_v54 }
 0x23a   :  { %2489 = vmatprep.mubr.msk.bf16.mxu1 %vm2807_vm3, %v2806_v35 }
 0x2f9   :  { %v332_v55 = vpop.f32.mrf.mxu1 }
 0x2fa   :  { %v333_v59 = vadd.f32 %v2290_v56, %v332_v55 }
 0x2fb   :  { %v2485_v57 = vpop.f32.mrf.mxu1 }
 0x2fd   :  { %v335_v58 = vpop.f32.mrf.mxu1 }
 0x2fe   :  { %v336_v60 = vadd.f32 %v2290_v56, %v335_v58 }
 0x2ff   :  { %v2486_v61 = vpop.f32.mrf.mxu1 }
 0x300   :  { %v3014_v62 = vpack.c.bf16 %v336_v60, %v333_v59 }
 0x302   :  { %341 = vrot.lane.b32.xlu0 %v3014_v62, %s2808_s25 }
 0x306   :  { %480 = vrot.lane.b32.xlu0 %v3014_v62, %s2809_s6 }
 0x30a   :  { %478 = vrot.lane.b32.xlu0 %v3014_v62, %s2810_s26 }
 0x374   :  { %v342_v63 = vpop.permute.xlu0 %341 }
 0x375   :  { %v348_v0 = vsel %vm343_vm4, %v342_v63, 0 }
 0x376   :  { %2488 = vmatpush3.bf16.xpose.msra.mxu1 %v348_v0 }
 0x377   :  { %2493 = vmatprep.subr.bf16.mxu1 %v2806_v35 }
 0x378   :  { %v481_v31 = vpop.permute.xlu0 %480 }
 0x379   :  { %v486_v33 = vsel %vm343_vm4, %v481_v31, 0 }
 0x37c   :  { %v479_v34 = vpop.permute.xlu0 %478 }
 0x37d   :  { %2490 = vmatmul.mubr.msk.bf16.vlgmr.msra.gmra.mxu1 %vm343_vm4, %v3014_v62 }
 0x37e   :  { %2495 = vmatprep.mubr.msk.bf16.mxu1 %vm2807_vm3, %v2806_v35 }
 0x43d   :  { %v384_v2 = vpop.f32.mrf.mxu1 }
 0x43e   :  { %v385_v3 = vadd.f32 %v384_v2, %v3031_v1 }
 0x43f   :  { %v2491_v4 = vpop.f32.mrf.mxu1 }
 0x440   :  { %v392_v6 = vsel %vm391_vm5, %v385_v3, -inf }
 0x441   :  { %393 = vmax.xlane.f32.xlu1 %v392_v6  ;;  %v387_v7 = vpop.f32.mrf.mxu1 }
 0x442   :  { %v388_v8 = vadd.f32 %v387_v7, %v3037_v5 }
 0x443   :  { %v2492_v9 = vpop.f32.mrf.mxu1 }
 0x444   :  { %v396_v10 = vsel %vm395_vm6, %v388_v8, -inf }
 0x445   :  { %397 = vmax.xlane.f32.xlu1 %v396_v10 }
 0x4ca   :  { %v394_v11 = vpop.xlane.xlu1 %393 }
 0x4cb   :  { %v399_v12 = vsub.f32 %v385_v3, %v394_v11 }
 0x4cd   :  { %v401_v13 = vmul.f32 1.442695, %v399_v12 }
 0x4ce   :  { %v398_v14 = vpop.xlane.xlu1 %397 }
 0x4cf   :  { %2715 = vpow2.f32 %v401_v13  ;;  %v400_v15 = vsub.f32 %v388_v8, %v398_v14 }
 0x4d1   :  { %v403_v16 = vmul.f32 1.442695, %v400_v15 }
 0x4d3   :  { %2717 = vpow2.f32 %v403_v16 }
 0x4dc   :  { %v2716_v18 = vpop.eup %2715 }
 0x4dd   :  { %v405_v19 = vsel %vm391_vm5, %v2716_v18, 0.0 }
 0x4de   :  { %406 = vadd.xlane.f32.xlu1 %v405_v19 }
 0x4e0   :  { %v2718_v20 = vpop.eup %2717 }
 0x4e1   :  { %v408_v21 = vsel %vm395_vm6, %v2718_v20, 0.0 }
 0x4e2   :  { %409 = vadd.xlane.f32.xlu1 %v408_v21 }
 0x4f3   :  { %416 = vrot.lane.b32.xlu1 %v3014_v62, %s3465_s30  ;;  %s3489_s30 = smov 40  }
 0x567   :  { %v407_v23 = vpop.xlane.xlu1 %406 }
 0x568   :  { %2719 = vrcp.f32 %v407_v23 }
 0x56b   :  { %v410_v24 = vpop.xlane.xlu1 %409 }
 0x56c   :  { %2721 = vrcp.f32 %v410_v24 }
 0x56f   :  { %v417_v25 = vpop.permute.xlu1 %416 }
 0x570   :  { %v423_v26 = vsel %vm421_vm7, %v417_v25, 0 }
 0x571   :  { %2494 = vmatpush3.bf16.msra.mxu1 %v423_v26 }
 0x572   :  { %2499 = vmatprep.subr.bf16.mxu1 %v2806_v35 }
 0x575   :  { %v2720_v27 = vpop.eup %2719 }
 0x576   :  { %v413_v29 = vmul.f32 %v2720_v27, %v2716_v18 }
 0x579   :  { %v2722_v28 = vpop.eup %2721 }
 0x57a   :  { %v414_v30 = vmul.f32 %v2722_v28, %v2718_v20 }
 0x57c   :  { %v415_v32 = vpack.c.bf16 %v414_v30, %v413_v29 }
 0x57e   :  { %2496 = vmatmul.mubr.msk.bf16.vlgmr.msra.gmra.mxu1 %vm391_vm5, %v415_v32 }
 0x57f   :  { %2500 = vmatpush3.bf16.xpose.msra.mxu1 %v486_v33  ;;  %2501 = vmatprep.mubr.msk.bf16.mxu1 %vm2807_vm3, %v2806_v35 }
 0x580   :  { %2505 = vmatprep.subr.bf16.mxu1 %v2806_v35 }
 0x586   :  { %2502 = vmatmul.mubr.msk.bf16.vlgmr.msra.gmra.mxu1 %vm343_vm4, %v479_v34 }
 0x587   :  { %2507 = vmatprep.mubr.msk.bf16.mxu1 %vm2807_vm3, %v2806_v35 }
 0x63e   :  { %v459_v36 = vpop.f32.mrf.mxu1 }
 0x63f   :  { %v2400_v37 = vpack.c.bf16 %v459_v36, %v459_v36 }
 0x640   :  { %v2497_v38 = vpop.f32.mrf.mxu1 }
 0x641   :  { %475 = vst.msk [vmem:[#allocation2] sm:$0xf] %vm474_vm8, %v2400_v37 }
 0x642   :  { %v462_v39 = vpop.f32.mrf.mxu1 }
 0x643   :  { %v2401_v40 = vpack.c.bf16 %v462_v39, %v462_v39 }
 0x644   :  { %v2498_v41 = vpop.f32.mrf.mxu1 }
 0x645   :  { %477 = vst.msk [vmem:[#allocation2 + $0x4] sm:$0x1] %vm476_vm9, %v2401_v40 }
 0x646   :  { %v522_v42 = vpop.f32.mrf.mxu1 }
 0x647   :  { %v523_v43 = vadd.f32 %v522_v42, %v3031_v1 }
 0x648   :  { %v2503_v44 = vpop.f32.mrf.mxu1 }
 0x649   :  { %v529_v45 = vsel %vm391_vm5, %v523_v43, -inf }
 0x64a   :  { %530 = vmax.xlane.f32.xlu0 %v529_v45  ;;  %v525_v46 = vpop.f32.mrf.mxu1 }
 0x64b   :  { %v526_v47 = vadd.f32 %v525_v46, %v3037_v5 }
 0x64c   :  { %v2504_v48 = vpop.f32.mrf.mxu1 }
 0x64d   :  { %v532_v49 = vsel %vm395_vm6, %v526_v47, -inf }
 0x64e   :  { %533 = vmax.xlane.f32.xlu1 %v532_v49 }
 0x65f   :  { %619 = vrot.lane.b32.xlu1 %v3014_v62, %s2812_s3 }
 0x663   :  { %617 = vrot.lane.b32.xlu1 %v3014_v62, %s3473_s0 }
 0x667   :  { %758 = vrot.lane.b32.xlu1 %v3014_v62, %s2814_s22 }
 0x6d3   :  { %v531_v50 = vpop.xlane.xlu0 %530 }
 0x6d4   :  { %v535_v51 = vsub.f32 %v523_v43, %v531_v50 }
 0x6d6   :  { %v537_v52 = vmul.f32 1.442695, %v535_v51 }
 0x6d7   :  { %v534_v53 = vpop.xlane.xlu1 %533 }
 0x6d8   :  { %2723 = vpow2.f32 %v537_v52  ;;  %v536_v54 = vsub.f32 %v526_v47, %v534_v53 }
 0x6da   :  { %v539_v55 = vmul.f32 1.442695, %v536_v54 }
 0x6db   :  { %v620_v3 = vpop.permute.xlu1 %619 }
 0x6dc   :  { %2725 = vpow2.f32 %v539_v55  ;;  %v625_v10 = vsel %vm343_vm4, %v620_v3, 0 }
 0x6df   :  { %v618_v9 = vpop.permute.xlu1 %617 }
 0x6e3   :  { %v759_v11 = vpop.permute.xlu1 %758 }
 0x6e4   :  { %v764_v12 = vsel %vm343_vm4, %v759_v11, 0 }
 0x6e5   :  { %v2724_v56 = vpop.eup %2723 }
 0x6e6   :  { %v541_v57 = vsel %vm391_vm5, %v2724_v56, 0.0 }
 0x6e7   :  { %542 = vadd.xlane.f32.xlu0 %v541_v57 }
 0x6e9   :  { %v2726_v58 = vpop.eup %2725 }
 0x6ea   :  { %v544_v59 = vsel %vm395_vm6, %v2726_v58, 0.0 }
 0x6eb   :  { %545 = vadd.xlane.f32.xlu0 %v544_v59 }
 0x701   :  { %552 = vrot.lane.b32.xlu0 %v3014_v62, %s3471_s24 }
 0x705   :  { %756 = vrot.lane.b32.xlu0 %v3014_v62, %s3472_s1  ;;  %s3492_s1 = smov 24  }
 0x770   :  { %v543_v60 = vpop.xlane.xlu0 %542 }
 0x771   :  { %2727 = vrcp.f32 %v543_v60 }
 0x774   :  { %v546_v61 = vpop.xlane.xlu0 %545 }
 0x775   :  { %2729 = vrcp.f32 %v546_v61 }
 0x778   :  { %v553_v63 = vpop.permute.xlu0 %552 }
 0x779   :  { %v558_v0 = vsel %vm421_vm7, %v553_v63, 0 }
 0x77a   :  { %2506 = vmatpush3.bf16.msra.mxu1 %v558_v0 }
 0x77b   :  { %2511 = vmatprep.subr.bf16.mxu1 %v2806_v35 }
 0x77c   :  { %v757_v13 = vpop.permute.xlu0 %756 }
 0x77e   :  { %v2728_v2 = vpop.eup %2727 }
 0x77f   :  { %v549_v6 = vmul.f32 %v2728_v2, %v2724_v56 }
 0x782   :  { %v2730_v4 = vpop.eup %2729 }
 0x783   :  { %v550_v7 = vmul.f32 %v2730_v4, %v2726_v58 }
 0x785   :  { %v551_v8 = vpack.c.bf16 %v550_v7, %v549_v6 }
 0x787   :  { %2508 = vmatmul.mubr.msk.bf16.vlgmr.msra.gmra.mxu1 %vm391_vm5, %v551_v8 }
 0x788   :  { %2512 = vmatpush3.bf16.xpose.msra.mxu1 %v625_v10  ;;  %2513 = vmatprep.mubr.msk.bf16.mxu1 %vm2807_vm3, %v2806_v35 }
 0x789   :  { %2523 = vmatprep.subr.bf16.mxu1 %v2806_v35 }
 0x78f   :  { %2514 = vmatmul.mubr.msk.bf16.vlgmr.msra.gmra.mxu1 %vm343_vm4, %v618_v9 }
 0x790   :  { %2524 = vmatpush3.bf16.xpose.msra.mxu1 %v764_v12  ;;  %2525 = vmatprep.mubr.msk.bf16.mxu1 %vm2807_vm3, %v2806_v35 }
 0x791   :  { %2535 = vmatprep.subr.bf16.mxu1 %v2806_v35 }
 0x797   :  { %2526 = vmatmul.mubr.msk.bf16.vlgmr.msra.gmra.mxu1 %vm343_vm4, %v757_v13 }
 0x798   :  { %2539 = vmatprep.mubr.msk.bf16.mxu1 %vm2807_vm3, %v2806_v35 }
 0x847   :  { %v594_v14 = vpop.f32.mrf.mxu1 }
 0x848   :  { %v2402_v57 = vpack.c.bf16 %v594_v14, %v594_v14 }
 0x849   :  { %v2509_v15 = vpop.f32.mrf.mxu1 }
 0x84b   :  { %v597_v16 = vpop.f32.mrf.mxu1 }
 0x84c   :  { %v2403_v58 = vpack.c.bf16 %v597_v16, %v597_v16 }
 0x84d   :  { %v2510_v18 = vpop.f32.mrf.mxu1 }
 0x84f   :  { %v661_v19 = vpop.f32.mrf.mxu1 }
 0x850   :  { %v662_v20 = vadd.f32 %v661_v19, %v3031_v1 }
 0x851   :  { %v2515_v21 = vpop.f32.mrf.mxu1 }
 0x852   :  { %v668_v23 = vsel %vm391_vm5, %v662_v20, -inf  ;;  %v2689_v21 = vld [vmem:[%s3444_s8 + $0x8] sm:$0xff]  }
 0x853   :  { %669 = vmax.xlane.f32.xlu1 %v668_v23  ;;  %v664_v24 = vpop.f32.mrf.mxu1  ;;  %2536 = vmatpush3.bf16.msra.mxu1 %v2689_v21 }
 0x854   :  { %v665_v25 = vadd.f32 %v664_v24, %v3037_v5  ;;  %v2690_v24 = vld [vmem:[%s3444_s8] sm:$0xff]   ;;  %2537 = vmatprep.subr.bf16.mxu1 %v2806_v35 }
 0x855   :  { %v2516_v26 = vpop.f32.mrf.mxu1 }
 0x856   :  { %v671_v27 = vsel %vm395_vm6, %v665_v25, -inf }
 0x857   :  { %672 = vmax.xlane.f32.xlu0 %v671_v27  ;;  %v800_v28 = vpop.f32.mrf.mxu1  ;;  %2538 = vmatpush3.bf16.msra.mxu1 %v2690_v24 }
 0x858   :  { %v801_v29 = vadd.f32 %v800_v28, %v3031_v1  ;;  %2551 = vmatprep.subr.bf16.mxu1 %v2806_v35 }
 0x859   :  { %v2527_v30 = vpop.f32.mrf.mxu1 }
 0x85a   :  { %v807_v31 = vsel %vm391_vm5, %v801_v29, -inf }
 0x85b   :  { %808 = vmax.xlane.f32.xlu0 %v807_v31  ;;  %v803_v32 = vpop.f32.mrf.mxu1 }
 0x85c   :  { %v804_v33 = vadd.f32 %v803_v32, %v3037_v5 }
 0x85d   :  { %v2528_v34 = vpop.f32.mrf.mxu1 }
 0x85e   :  { %v810_v36 = vsel %vm395_vm6, %v804_v33, -inf }
 0x85f   :  { %811 = vmax.xlane.f32.xlu0 %v810_v36 }
 0x8dc   :  { %v670_v37 = vpop.xlane.xlu1 %669 }
 0x8dd   :  { %v674_v38 = vsub.f32 %v662_v20, %v670_v37 }
 0x8df   :  { %v676_v39 = vmul.f32 1.442695, %v674_v38 }
 0x8e0   :  { %v673_v40 = vpop.xlane.xlu0 %672 }
 0x8e1   :  { %2731 = vpow2.f32 %v676_v39  ;;  %v675_v41 = vsub.f32 %v665_v25, %v673_v40  ;;  %v2314_v40 = vld [vmem:[%s3445_s9] ss:$0 sm:$0xff] }
 0x8e3   :  { %v678_v42 = vmul.f32 1.442695, %v675_v41 }
 0x8e4   :  { %v809_v43 = vpop.xlane.xlu0 %808 }
 0x8e5   :  { %2733 = vpow2.f32 %v678_v42  ;;  %v813_v44 = vsub.f32 %v801_v29, %v809_v43 }
 0x8e7   :  { %v815_v45 = vmul.f32 1.442695, %v813_v44 }
 0x8e8   :  { %v812_v46 = vpop.xlane.xlu0 %811 }
 0x8e9   :  { %2735 = vpow2.f32 %v815_v45  ;;  %v814_v47 = vsub.f32 %v804_v33, %v812_v46 }
 0x8eb   :  { %v817_v48 = vmul.f32 1.442695, %v814_v47 }
 0x8ed   :  { %2737 = vpow2.f32 %v817_v48 }
 0x8ee   :  { %v2732_v49 = vpop.eup %2731 }
 0x8ef   :  { %v680_v50 = vsel %vm391_vm5, %v2732_v49, 0.0 }
 0x8f0   :  { %681 = vadd.xlane.f32.xlu1 %v680_v50 }
 0x8f2   :  { %v2734_v51 = vpop.eup %2733 }
 0x8f3   :  { %v683_v52 = vsel %vm395_vm6, %v2734_v51, 0.0 }
 0x8f4   :  { %684 = vadd.xlane.f32.xlu0 %v683_v52 }
 0x8f6   :  { %v2736_v53 = vpop.eup %2735 }
 0x8f7   :  { %v819_v54 = vsel %vm391_vm5, %v2736_v53, 0.0 }
 0x8f8   :  { %820 = vadd.xlane.f32.xlu1 %v819_v54 }
 0x8fa   :  { %v2738_v55 = vpop.eup %2737 }
 0x8fb   :  { %v822_v56 = vsel %vm395_vm6, %v2738_v55, 0.0 }
 0x8fc   :  { %823 = vadd.xlane.f32.xlu0 %v822_v56 }
 0x909   :  { %691 = vrot.lane.b32.xlu1 %v3014_v62, %s3466_s23  ;;  %s3491_s23 = smov 16  }
 0x90d   :  { %607 = vrot.lane.b32.xlu1 %v2402_v57, %s3462_s29 }
 0x911   :  { %609 = vrot.lane.b32.xlu1 %v2403_v58, %s3462_s29  ;;  %s3467_s29 = smov 24   ;;  %v2692_v58 = vld [vmem:[%s3446_s12 + $0x8] sm:$0xff]  }
 0x912   :  { %830 = vrot.lane.b32.xlu0 %v3014_v62, %s3464_s28  ;;  %s3488_s28 = smov 64  }
 0x979   :  { %v682_v59 = vpop.xlane.xlu1 %681 }
 0x97a   :  { %2739 = vrcp.f32 %v682_v59  ;;  %v2693_v59 = vld [vmem:[%s3446_s12] sm:$0xff]  }
 0x97d   :  { %v685_v60 = vpop.xlane.xlu0 %684 }
 0x97e   :  { %2741 = vrcp.f32 %v685_v60 }
 0x981   :  { %v821_v61 = vpop.xlane.xlu1 %820 }
 0x982   :  { %2743 = vrcp.f32 %v821_v61 }
 0x985   :  { %v692_v63 = vpop.permute.xlu1 %691  ;;  %v824_v0 = vpop.xlane.xlu0 %823 }
 0x986   :  { %v697_v2 = vsel %vm421_vm7, %v692_v63, 0  ;;  %2745 = vrcp.f32 %v824_v0 }
 0x987   :  { %2518 = vmatpush3.bf16.msra.mxu0 %v697_v2  ;;  %v2740_v3 = vpop.eup %2739 }
 0x988   :  { %2529 = vmatprep.subr.bf16.mxu0 %v2806_v35  ;;  %v688_v6 = vmul.f32 %v2740_v3, %v2732_v49 }
 0x989   :  { %v608_v4 = vpop.permute.xlu1 %607  ;;  %v831_v8 = vpop.permute.xlu0 %830 }
 0x98a   :  { %614 = vst.msk [vmem:[#allocation2] sm:$0xf] %vm613_vm10, %v608_v4  ;;  %v836_v11 = vsel %vm421_vm7, %v831_v8, 0 }
 0x98b   :  { %v2742_v62 = vpop.eup %2741 }
 0x98c   :  { %v689_v7 = vmul.f32 %v2742_v62, %v2734_v51 }
 0x98d   :  { %v610_v9 = vpop.permute.xlu1 %609 }
 0x98e   :  { %616 = vst.msk [vmem:[#allocation2 + $0x4] sm:$0x1] %vm615_vm11, %v610_v9  ;;  %v690_v10 = vpack.c.bf16 %v689_v7, %v688_v6  ;;  %v2315_v6 = vld [vmem:[%s3447_s10] ss:$0 sm:$0xff] }
 0x98f   :  { %v2744_v12 = vpop.eup %2743 }
 0x990   :  { %2520 = vmatmul.mubr.msk.bf16.vlgmr.msra.gmra.mxu0 %vm391_vm5, %v690_v10  ;;  %v827_v14 = vmul.f32 %v2744_v12, %v2736_v53  ;;  %v2316_v10 = vld [vmem:[%s3448_s11] ss:$0 sm:$0xff] }
 0x991   :  { %2530 = vmatpush3.bf16.msra.mxu0 %v836_v11  ;;  %2531 = vmatprep.mubr.msk.bf16.mxu0 %vm2807_vm3, %v2806_v35 }
 0x992   :  { %2543 = vmatprep.subr.bf16.mxu0 %v2806_v35 }
 0x993   :  { %v2746_v13 = vpop.eup %2745 }
 0x994   :  { %v828_v15 = vmul.f32 %v2746_v13, %v2738_v55 }
 0x996   :  { %v829_v16 = vpack.c.bf16 %v828_v15, %v827_v14  ;;  %v2694_v15 = vld [vmem:[%s3449_s14 + $0x18] sm:$0xff]  }
 0x998   :  { %2532 = vmatmul.mubr.msk.bf16.vlgmr.msra.gmra.mxu0 %vm391_vm5, %v829_v16  ;;  %v2695_v16 = vld [vmem:[%s3449_s14 + $0x10] sm:$0xff]  }
 0x999   :  { %2547 = vmatprep.mubr.msk.bf16.mxu0 %vm2807_vm3, %v2806_v35  ;;  %2544 = vmatpush3.bf16.msra.mxu0 %v2692_v58 }
 0x99a   :  { %2545 = vmatprep.subr.bf16.mxu0 %v2806_v35 }
 0x99d   :  { %2546 = vmatpush3.bf16.msra.mxu0 %v2693_v59 }
 0x99e   :  { %2563 = vmatprep.subr.bf16.mxu0 %v2806_v35 }
 0xa50   :  { %v733_v18 = vpop.f32.mrf.mxu0 }
 0xa51   :  { %v2404_v19 = vpack.c.bf16 %v733_v18, %v733_v18  ;;  %v2696_v18 = vld [vmem:[%s3449_s14 + $0x8] sm:$0xff]  }
 0xa52   :  { %v2521_v20 = vpop.f32.mrf.mxu0 }
 0xa53   :  { %746 = vrot.lane.b32.xlu1 %v2404_v19, %s3469_s4  ;;  %v2697_v19 = vld [vmem:[%s3449_s14] sm:$0xff]  }
 0xa54   :  { %v736_v23 = vpop.f32.mrf.mxu0  ;;  %v2317_v20 = vld [vmem:[%s3450_s13] ss:$0 sm:$0xff] }
 0xa55   :  { %v2405_v25 = vpack.c.bf16 %v736_v23, %v736_v23 }
 0xa56   :  { %v2522_v26 = vpop.f32.mrf.mxu0 }
 0xa57   :  { %748 = vrot.lane.b32.xlu0 %v2405_v25, %s3469_s4 }
 0xa58   :  { %v872_v27 = vpop.f32.mrf.mxu0 }
 0xa59   :  { %v2406_v28 = vpack.c.bf16 %v872_v27, %v872_v27 }
 0xa5a   :  { %v2533_v29 = vpop.f32.mrf.mxu0 }
 0xa5b   :  { %885 = vrot.lane.b32.xlu1 %v2406_v28, %s3467_s29 }
 0xa5c   :  { %v875_v30 = vpop.f32.mrf.mxu0 }
 0xa5d   :  { %v2407_v31 = vpack.c.bf16 %v875_v30, %v875_v30 }
 0xa5e   :  { %v2534_v32 = vpop.f32.mrf.mxu0 }
 0xa5f   :  { %887 = vrot.lane.b32.xlu0 %v2407_v31, %s3467_s29  ;;  %s3490_s29 = smov 8  }
 0xac5   :  { %v747_v33 = vpop.permute.xlu1 %746 }
 0xac6   :  { %753 = vst.msk [vmem:[#allocation2] sm:$0xf] %vm752_vm12, %v747_v33 }
 0xac9   :  { %v749_v34 = vpop.permute.xlu0 %748 }
 0xaca   :  { %755 = vst.msk [vmem:[#allocation2 + $0x4] sm:$0x1] %vm754_vm13, %v749_v34 }
 0xacd   :  { %v886_v36 = vpop.permute.xlu1 %885 }
 0xace   :  { %892 = vst.msk [vmem:[#allocation2] sm:$0xf] %vm891_vm14, %v886_v36 }
 0xad1   :  { %v888_v37 = vpop.permute.xlu0 %887 }
 0xad2   :  { %894 = vst.msk [vmem:[#allocation2 + $0x4] sm:$0x1] %vm893_vm15, %v888_v37 }
 0xad9   :  { %v2691_v38 = vld [vmem:[#allocation2] sm:$0x1f]  }
 0xada   :  { %2540 = vmatmul.mubr.msk.bf16.vlgmr.msra.gmra.mxu1 %vm226_vm1, %v2691_v38 }
 0xadb   :  { %2559 = vmatprep.mubr.msk.bf16.mxu1 %vm2807_vm3, %v2806_v35  ;;  %2552 = vmatpush3.bf16.msra.mxu1 %v2694_v15 }
 0xadc   :  { %2553 = vmatprep.subr.bf16.mxu1 %v2806_v35 }
 0xadf   :  { %2554 = vmatpush3.bf16.msra.mxu1 %v2695_v16  ;;  %v2330_v16 = vld [vmem:[%s3441_s5 + $0x1] ss:$0 sm:$0xff]  ;;  %s3484_s5 = smov 112  }
 0xae0   :  { %2555 = vmatprep.subr.bf16.mxu1 %v2806_v35 }
 0xae3   :  { %2556 = vmatpush3.bf16.msra.mxu1 %v2696_v18 }
 0xae4   :  { %2557 = vmatprep.subr.bf16.mxu1 %v2806_v35 }
 0xae7   :  { %2558 = vmatpush3.bf16.msra.mxu1 %v2697_v19 }
 0xae8   :  { %2577 = vmatprep.subr.bf16.mxu1 %v2806_v35 }
 0xb9a   :  { %v955_v39 = vpop.f32.mrf.mxu1 }
 0xb9b   :  { %v962_v41 = vadd.f32 %v955_v39, %v2973_v17 }
 0xb9c   :  { %v2541_v42 = vpop.f32.mrf.mxu1 }
 0xb9d   :  { %v3142_v43 = vadd.f32 %v2314_v40, %v962_v41 }
 0xb9e   :  { %v958_v44 = vpop.f32.mrf.mxu1 }
 0xb9f   :  { %v963_v45 = vadd.f32 %v958_v44, %v2980_v22  ;;  %v975_v46 = vsel %vm226_vm1, %v3142_v43, 0.0 }
 0xba0   :  { %976 = vadd.xlane.f32.xlu1 %v975_v46  ;;  %v2542_v47 = vpop.f32.mrf.mxu1 }
 0xba1   :  { %v3147_v48 = vadd.f32 %v2314_v40, %v963_v45 }
 0xba3   :  { %v978_v49 = vsel %vm230_vm2, %v3147_v48, 0.0 }
 0xba4   :  { %979 = vadd.xlane.f32.xlu0 %v978_v49 }
 0xc29   :  { %v977_v50 = vpop.xlane.xlu1 %976 }
 0xc2a   :  { %v981_v51 = vmul.f32 0.03125, %v977_v50 }
 0xc2c   :  { %v983_v17 = vsub.f32 %v3142_v43, %v981_v51  ;;  %v2326_v51 = vld [vmem:[%s3451_s15] ss:$0 sm:$0xff] }
 0xc2d   :  { %v980_v52 = vpop.xlane.xlu0 %979 }
 0xc2e   :  { %v982_v53 = vmul.f32 0.03125, %v980_v52  ;;  %v985_v54 = vmul.f32 %v983_v17, %v983_v17 }
 0xc30   :  { %v984_v22 = vsub.f32 %v3147_v48, %v982_v53  ;;  %v987_v55 = vsel %vm226_vm1, %v985_v54, 0.0 }
 0xc31   :  { %988 = vadd.xlane.f32.xlu0 %v987_v55 }
 0xc32   :  { %v986_v56 = vmul.f32 %v984_v22, %v984_v22 }
 0xc34   :  { %v990_v57 = vsel %vm230_vm2, %v986_v56, 0.0 }
 0xc35   :  { %991 = vadd.xlane.f32.xlu0 %v990_v57 }
 0xcba   :  { %v989_v60 = vpop.xlane.xlu0 %988 }
 0xcbb   :  { %v993_v61 = vmul.f32 0.03125, %v989_v60 }
 0xcbd   :  { %v995_v63 = vadd.f32 1e-12, %v993_v61 }
 0xcbe   :  { %v992_v0 = vpop.xlane.xlu0 %991 }
 0xcbf   :  { %2747 = vrsqrt.f32 %v995_v63  ;;  %v994_v2 = vmul.f32 0.03125, %v992_v0 }
 0xcc1   :  { %v996_v3 = vadd.f32 1e-12, %v994_v2 }
 0xcc3   :  { %2749 = vrsqrt.f32 %v996_v3 }
 0xccc   :  { %v2748_v4 = vpop.eup %2747 }
 0xccd   :  { %v999_v62 = vmul.f32 %v2748_v4, %v983_v17 }
 0xccf   :  { %v1007_v9 = vmul.f32 %v2315_v6, %v999_v62  ;;  %v2698_v62 = vld [vmem:[%s3482_s27 + $0x18] sm:$0xff]  }
 0xcd0   :  { %v2750_v7 = vpop.eup %2749 }
 0xcd1   :  { %v1000_v8 = vmul.f32 %v2750_v7, %v984_v22  ;;  %v1015_v12 = vadd.f32 %v2316_v10, %v1007_v9 }
 0xcd3   :  { %v1008_v11 = vmul.f32 %v2315_v6, %v1000_v8  ;;  %v2699_v6 = vld [vmem:[%s3482_s27 + $0x10] sm:$0xff]  }
 0xcd5   :  { %v1016_v13 = vadd.f32 %v2316_v10, %v1008_v11 }
 0xcd7   :  { %v1017_v14 = vpack.c.bf16 %v1016_v13, %v1015_v12 }
 0xcd9   :  { %2548 = vmatmul.mubr.msk.bf16.vlgmr.msra.gmra.mxu0 %vm226_vm1, %v1017_v14  ;;  %v2329_v14 = vld [vmem:[%s3483_s21 + $0x1] ss:$0 sm:$0xff] }
 0xcda   :  { %2567 = vmatprep.mubr.msk.bf16.mxu0 %vm2807_vm3, %v2806_v35  ;;  %2564 = vmatpush3.bf16.msra.mxu0 %v2698_v62  ;;  %v2804_v62 = vld [vmem:[%s3443_s2 + $0x8] sm:$0x3] }
 0xcdb   :  { %2565 = vmatprep.subr.bf16.mxu0 %v2806_v35 }
 0xcde   :  { %2566 = vmatpush3.bf16.msra.mxu0 %v2699_v6 }
 0xcdf   :  { %2571 = vmatprep.subr.bf16.mxu0 %v2806_v35 }
 0xd99   :  { %v1078_v21 = vpop.f32.mrf.mxu0 }
 0xd9a   :  { %v1079_v23 = vadd.f32 %v2317_v20, %v1078_v21 }
 0xd9b   :  { %v2549_v24 = vpop.f32.mrf.mxu0 }
 0xd9c   :  { %v1087_v25 = vmul.f32 0.044715, %v1079_v23  ;;  %v1085_v42 = vmul.f32 0.5, %v1079_v23 }
 0xd9d   :  { %v1081_v26 = vpop.f32.mrf.mxu0 }
 0xd9e   :  { %v1089_v27 = vmul.f32 %v1087_v25, %v1079_v23  ;;  %v1082_v28 = vadd.f32 %v2317_v20, %v1081_v26 }
 0xd9f   :  { %v2550_v29 = vpop.f32.mrf.mxu0 }
 0xda0   :  { %v1091_v30 = vmul.f32 %v1089_v27, %v1079_v23  ;;  %v1088_v31 = vmul.f32 0.044715, %v1082_v28  ;;  %v1086_v44 = vmul.f32 0.5, %v1082_v28  ;;  %v2336_v27 = vld [vmem:[%s3442_s7 + $0x1] ss:$0 sm:$0xff]  ;;  %s3485_s7 = smov 104  }
 0xda2   :  { %v1093_v32 = vadd.f32 %v1091_v30, %v1079_v23  ;;  %v1090_v33 = vmul.f32 %v1088_v31, %v1082_v28 }
 0xda4   :  { %v1095_v34 = vmul.f32 0.7978846, %v1093_v32  ;;  %v1092_v36 = vmul.f32 %v1090_v33, %v1082_v28 }
 0xda6   :  { %2751 = vtanh.f32 %v1095_v34  ;;  %v1094_v37 = vadd.f32 %v1092_v36, %v1082_v28 }
 0xda8   :  { %v1096_v38 = vmul.f32 0.7978846, %v1094_v37 }
 0xdaa   :  { %2753 = vtanh.f32 %v1096_v38 }
 0xdb3   :  { %v2752_v39 = vpop.eup %2751 }
 0xdb4   :  { %v1099_v40 = vadd.f32 1.0, %v2752_v39 }
 0xdb6   :  { %v1101_v46 = vmul.f32 %v1099_v40, %v1085_v42 }
 0xdb7   :  { %v2754_v41 = vpop.eup %2753 }
 0xdb8   :  { %v1100_v45 = vadd.f32 1.0, %v2754_v41 }
 0xdba   :  { %v1102_v47 = vmul.f32 %v1100_v45, %v1086_v44 }
 0xdbc   :  { %v1103_v49 = vpack.c.bf16 %v1102_v47, %v1101_v46 }
 0xdbe   :  { %2560 = vmatmul.mubr.msk.bf16.vlgmr.msra.gmra.mxu1 %vm175_vm0, %v1103_v49 }
 0xdbf   :  { %2579 = vmatprep.mubr.msk.bf16.mxu1 %vm2807_vm3, %v2806_v35 }
 0xe7e   :  { %v1173_v50 = vpop.f32.mrf.mxu1 }
 0xe7f   :  { %v1180_v17 = vadd.f32 %v1173_v50, %v3142_v43 }
 0xe80   :  { %v2561_v52 = vpop.f32.mrf.mxu1 }
 0xe81   :  { %v3198_v53 = vadd.f32 %v2326_v51, %v1180_v17 }
 0xe82   :  { %v1176_v54 = vpop.f32.mrf.mxu1 }
 0xe83   :  { %v1181_v22 = vadd.f32 %v1176_v54, %v3147_v48  ;;  %v1195_v55 = vsel %vm226_vm1, %v3198_v53, 0.0 }
 0xe84   :  { %1196 = vadd.xlane.f32.xlu1 %v1195_v55  ;;  %v2562_v56 = vpop.f32.mrf.mxu1 }
 0xe85   :  { %v3203_v57 = vadd.f32 %v2326_v51, %v1181_v22 }
 0xe87   :  { %v1198_v58 = vsel %vm230_vm2, %v3203_v57, 0.0 }
 0xe88   :  { %1199 = vadd.xlane.f32.xlu0 %v1198_v58 }
 0xf0d   :  { %v1197_v59 = vpop.xlane.xlu1 %1196 }
 0xf0e   :  { %v1201_v60 = vmul.f32 0.03125, %v1197_v59 }
 0xf10   :  { %v1203_v43 = vsub.f32 %v3198_v53, %v1201_v60 }
 0xf11   :  { %v1200_v61 = vpop.xlane.xlu0 %1199 }
 0xf12   :  { %v1202_v63 = vmul.f32 0.03125, %v1200_v61  ;;  %v1205_v0 = vmul.f32 %v1203_v43, %v1203_v43 }
 0xf14   :  { %v1204_v48 = vsub.f32 %v3203_v57, %v1202_v63  ;;  %v1207_v2 = vsel %vm226_vm1, %v1205_v0, 0.0 }
 0xf15   :  { %1208 = vadd.xlane.f32.xlu1 %v1207_v2 }
 0xf16   :  { %v1206_v3 = vmul.f32 %v1204_v48, %v1204_v48 }
 0xf18   :  { %v1210_v4 = vsel %vm230_vm2, %v1206_v3, 0.0 }
 0xf19   :  { %1211 = vadd.xlane.f32.xlu0 %v1210_v4 }
 0xf9e   :  { %v1209_v7 = vpop.xlane.xlu1 %1208 }
 0xf9f   :  { %v1213_v8 = vmul.f32 0.03125, %v1209_v7 }
 0xfa1   :  { %v1215_v9 = vadd.f32 1e-12, %v1213_v8 }
 0xfa2   :  { %v1212_v10 = vpop.xlane.xlu0 %1211 }
 0xfa3   :  { %2755 = vrsqrt.f32 %v1215_v9  ;;  %v1214_v11 = vmul.f32 0.03125, %v1212_v10 }
 0xfa5   :  { %v1216_v12 = vadd.f32 1e-12, %v1214_v11 }
 0xfa7   :  { %2757 = vrsqrt.f32 %v1216_v12 }
 0xfb0   :  { %v2756_v13 = vpop.eup %2755 }
 0xfb1   :  { %v1219_v15 = vmul.f32 %v2756_v13, %v1203_v43 }
 0xfb3   :  { %v1227_v18 = vmul.f32 %v2329_v14, %v1219_v15 }
 0xfb4   :  { %v2758_v19 = vpop.eup %2757 }
 0xfb5   :  { %v1220_v20 = vmul.f32 %v2758_v19, %v1204_v48  ;;  %v1235_v21 = vadd.f32 %v2330_v16, %v1227_v18  ;;  %v2803_v48 = vld [vmem:[%s3443_s2] sm:$0xff]  ;;  %s3486_s2 = smov 56  }
 0xfb7   :  { %v1228_v23 = vmul.f32 %v2329_v14, %v1220_v20 }
 0xfb9   :  { %v1236_v24 = vadd.f32 %v2330_v16, %v1228_v23 }
 0xfbb   :  { %v1237_v25 = vpack.c.bf16 %v1236_v24, %v1235_v21 }
 0xfbd   :  { %2568 = vmatmul.mubr.msk.bf16.vlgmr.msra.gmra.mxu0 %vm226_vm1, %v1237_v25 }
 0xfbe   :  { %2573 = vmatprep.mubr.msk.bf16.mxu0 %vm2807_vm3, %v2806_v35 }
0x107d   :  { %v1300_v26 = vpop.f32.mrf.mxu0 }
0x107e   :  { %v1301_v30 = vadd.f32 %v2336_v27, %v1300_v26 }
0x107f   :  { %v2569_v28 = vpop.f32.mrf.mxu0 }
0x1081   :  { %v1303_v29 = vpop.f32.mrf.mxu0 }
0x1082   :  { %v1304_v31 = vadd.f32 %v2336_v27, %v1303_v29 }
0x1083   :  { %v2570_v32 = vpop.f32.mrf.mxu0 }
0x1084   :  { %v3231_v33 = vpack.c.bf16 %v1304_v31, %v1301_v30 }
0x1086   :  { %1442 = vrot.lane.b32.xlu0 %v3231_v33, %s2809_s6  ;;  %1309 = vrot.lane.b32.xlu1 %v3231_v33, %s2808_s25 }
0x108a   :  { %1716 = vrot.lane.b32.xlu0 %v3231_v33, %s2814_s22  ;;  %1440 = vrot.lane.b32.xlu1 %v3231_v33, %s2810_s26  ;;  %s3487_s22 = smov 48  }
0x108e   :  { %1579 = vrot.lane.b32.xlu1 %v3231_v33, %s2812_s3 }
0x1092   :  { %1577 = vrot.lane.b32.xlu1 %v3231_v33, %s3484_s5 }
0x1096   :  { %1714 = vrot.lane.b32.xlu1 %v3231_v33, %s3485_s7 }
0x10f8   :  { %v1310_v34 = vpop.permute.xlu1 %1309  ;;  %v1443_v37 = vpop.permute.xlu0 %1442 }
0x10f9   :  { %v1315_v36 = vsel %vm343_vm4, %v1310_v34, 0  ;;  %v1448_v39 = vsel %vm343_vm4, %v1443_v37, 0 }
0x10fa   :  { %2572 = vmatpush3.bf16.xpose.msra.mxu0 %v1315_v36 }
0x10fb   :  { %2583 = vmatprep.subr.bf16.mxu0 %v2806_v35 }
0x10fc   :  { %v1441_v38 = vpop.permute.xlu1 %1440  ;;  %v1717_v42 = vpop.permute.xlu0 %1716 }
0x10fd   :  { %v1722_v45 = vsel %vm343_vm4, %v1717_v42, 0 }
0x1100   :  { %v1580_v40 = vpop.permute.xlu1 %1579 }
0x1101   :  { %2574 = vmatmul.mubr.msk.bf16.vlgmr.msra.gmra.mxu0 %vm343_vm4, %v3231_v33  ;;  %v1585_v41 = vsel %vm343_vm4, %v1580_v40, 0 }
0x1102   :  { %2584 = vmatpush3.bf16.xpose.msra.mxu0 %v1448_v39  ;;  %2585 = vmatprep.mubr.msk.bf16.mxu0 %vm2807_vm3, %v2806_v35 }
0x1103   :  { %2595 = vmatprep.subr.bf16.mxu0 %v2806_v35 }
0x1104   :  { %v1578_v44 = vpop.permute.xlu1 %1577 }
0x1108   :  { %v1715_v46 = vpop.permute.xlu1 %1714 }
0x1109   :  { %2586 = vmatmul.mubr.msk.bf16.vlgmr.msra.gmra.mxu0 %vm343_vm4, %v1441_v38 }
0x110a   :  { %2596 = vmatpush3.bf16.xpose.msra.mxu0 %v1585_v41  ;;  %2597 = vmatprep.mubr.msk.bf16.mxu0 %vm2807_vm3, %v2806_v35 }
0x110b   :  { %2607 = vmatprep.subr.bf16.mxu0 %v2806_v35 }
0x1111   :  { %2598 = vmatmul.mubr.msk.bf16.vlgmr.msra.gmra.mxu0 %vm343_vm4, %v1578_v44 }
0x1112   :  { %2608 = vmatpush3.bf16.xpose.msra.mxu0 %v1722_v45  ;;  %2609 = vmatprep.mubr.msk.bf16.mxu0 %vm2807_vm3, %v2806_v35 }
0x1113   :  { %2619 = vmatprep.subr.bf16.mxu0 %v2806_v35 }
0x1119   :  { %2610 = vmatmul.mubr.msk.bf16.vlgmr.msra.gmra.mxu0 %vm343_vm4, %v1715_v46 }
0x111a   :  { %2623 = vmatprep.mubr.msk.bf16.mxu0 %vm2807_vm3, %v2806_v35 }
0x11c1   :  { %v1351_v47 = vpop.f32.mrf.mxu0 }
0x11c2   :  { %v1352_v49 = vadd.f32 %v1351_v47, %v3031_v1 }
0x11c3   :  { %v2575_v50 = vpop.f32.mrf.mxu0 }
0x11c4   :  { %v1358_v51 = vsel %vm391_vm5, %v1352_v49, -inf }
0x11c5   :  { %1359 = vmax.xlane.f32.xlu0 %v1358_v51  ;;  %v1354_v17 = vpop.f32.mrf.mxu0 }
0x11c6   :  { %v1355_v52 = vadd.f32 %v1354_v17, %v3037_v5 }
0x11c7   :  { %v2576_v54 = vpop.f32.mrf.mxu0 }
0x11c8   :  { %v1361_v22 = vsel %vm395_vm6, %v1355_v52, -inf }
0x11c9   :  { %1362 = vmax.xlane.f32.xlu1 %v1361_v22  ;;  %v1484_v55 = vpop.f32.mrf.mxu0 }
0x11ca   :  { %v1485_v56 = vadd.f32 %v1484_v55, %v3031_v1 }
0x11cb   :  { %v2587_v58 = vpop.f32.mrf.mxu0 }
0x11cc   :  { %v1491_v59 = vsel %vm391_vm5, %v1485_v56, -inf }
0x11cd   :  { %1492 = vmax.xlane.f32.xlu0 %v1491_v59  ;;  %v1487_v60 = vpop.f32.mrf.mxu0 }
0x11ce   :  { %v1488_v43 = vadd.f32 %v1487_v60, %v3037_v5 }
0x11cf   :  { %v2588_v61 = vpop.f32.mrf.mxu0 }
0x11d0   :  { %v1494_v63 = vsel %vm395_vm6, %v1488_v43, -inf }
0x11d1   :  { %1495 = vmax.xlane.f32.xlu0 %v1494_v63  ;;  %v1621_v0 = vpop.f32.mrf.mxu0 }
0x11d2   :  { %v1622_v2 = vadd.f32 %v2803_v48, %v1621_v0 }
0x11d3   :  { %v2599_v3 = vpop.f32.mrf.mxu0 }
0x11d4   :  { %v1628_v1 = vsel %vm391_vm5, %v1622_v2, -inf }
0x11d5   :  { %1629 = vmax.xlane.f32.xlu0 %v1628_v1  ;;  %v1624_v4 = vpop.f32.mrf.mxu0 }
0x11d6   :  { %v1625_v5 = vadd.f32 %v2804_v62, %v1624_v4 }
0x11d7   :  { %v2600_v6 = vpop.f32.mrf.mxu0 }
0x11d8   :  { %v1631_v7 = vsel %vm395_vm6, %v1625_v5, -inf }
0x11d9   :  { %1632 = vmax.xlane.f32.xlu1 %v1631_v7  ;;  %v1758_v8 = vpop.f32.mrf.mxu0 }
0x11da   :  { %v1759_v9 = vadd.f32 %v2803_v48, %v1758_v8 }
0x11db   :  { %v2611_v10 = vpop.f32.mrf.mxu0 }
0x11dc   :  { %v1765_v11 = vsel %vm391_vm5, %v1759_v9, -inf }
0x11dd   :  { %1766 = vmax.xlane.f32.xlu0 %v1765_v11  ;;  %v1761_v12 = vpop.f32.mrf.mxu0 }
0x11de   :  { %v1762_v13 = vadd.f32 %v2804_v62, %v1761_v12 }
0x11df   :  { %v2612_v14 = vpop.f32.mrf.mxu0 }
0x11e0   :  { %v1768_v15 = vsel %vm395_vm6, %v1762_v13, -inf }
0x11e1   :  { %1769 = vmax.xlane.f32.xlu1 %v1768_v15 }
0x124e   :  { %v1360_v16 = vpop.xlane.xlu0 %1359 }
0x124f   :  { %v1364_v18 = vsub.f32 %v1352_v49, %v1360_v16 }
0x1251   :  { %v1366_v19 = vmul.f32 1.442695, %v1364_v18 }
0x1252   :  { %v1363_v20 = vpop.xlane.xlu1 %1362 }
0x1253   :  { %2759 = vpow2.f32 %v1366_v19  ;;  %v1365_v21 = vsub.f32 %v1355_v52, %v1363_v20 }
0x1255   :  { %v1368_v23 = vmul.f32 1.442695, %v1365_v21 }
0x1256   :  { %v1493_v24 = vpop.xlane.xlu0 %1492 }
0x1257   :  { %2761 = vpow2.f32 %v1368_v23  ;;  %v1497_v25 = vsub.f32 %v1485_v56, %v1493_v24 }
0x1259   :  { %v1499_v26 = vmul.f32 1.442695, %v1497_v25 }
0x125a   :  { %v1496_v27 = vpop.xlane.xlu0 %1495 }
0x125b   :  { %2763 = vpow2.f32 %v1499_v26  ;;  %v1498_v28 = vsub.f32 %v1488_v43, %v1496_v27 }
0x125d   :  { %v1501_v29 = vmul.f32 1.442695, %v1498_v28 }
0x125e   :  { %v1630_v30 = vpop.xlane.xlu0 %1629 }
0x125f   :  { %2765 = vpow2.f32 %v1501_v29  ;;  %v1634_v31 = vsub.f32 %v1622_v2, %v1630_v30 }
0x1260   :  { %v2760_v32 = vpop.eup %2759 }
0x1261   :  { %v1636_v34 = vmul.f32 1.442695, %v1634_v31  ;;  %v1370_v36 = vsel %vm391_vm5, %v2760_v32, 0.0 }
0x1262   :  { %v1633_v37 = vpop.xlane.xlu1 %1632  ;;  %1371 = vadd.xlane.f32.xlu0 %v1370_v36 }
0x1263   :  { %2767 = vpow2.f32 %v1636_v34  ;;  %v1635_v38 = vsub.f32 %v1625_v5, %v1633_v37 }
0x1264   :  { %v2762_v39 = vpop.eup %2761 }
0x1265   :  { %v1638_v40 = vmul.f32 1.442695, %v1635_v38  ;;  %v1373_v41 = vsel %vm395_vm6, %v2762_v39, 0.0 }
0x1266   :  { %v1767_v42 = vpop.xlane.xlu0 %1766  ;;  %1374 = vadd.xlane.f32.xlu1 %v1373_v41 }
0x1267   :  { %2769 = vpow2.f32 %v1638_v40  ;;  %v1771_v44 = vsub.f32 %v1759_v9, %v1767_v42 }
0x1268   :  { %v2764_v45 = vpop.eup %2763 }
0x1269   :  { %v1773_v46 = vmul.f32 1.442695, %v1771_v44  ;;  %v1503_v47 = vsel %vm391_vm5, %v2764_v45, 0.0 }
0x126a   :  { %1504 = vadd.xlane.f32.xlu0 %v1503_v47  ;;  %v1770_v56 = vpop.xlane.xlu1 %1769 }
0x126b   :  { %2771 = vpow2.f32 %v1773_v46  ;;  %v1772_v58 = vsub.f32 %v1762_v13, %v1770_v56 }
0x126c   :  { %v2766_v49 = vpop.eup %2765 }
0x126d   :  { %v1506_v50 = vsel %vm395_vm6, %v2766_v49, 0.0  ;;  %v1775_v59 = vmul.f32 1.442695, %v1772_v58 }
0x126e   :  { %1507 = vadd.xlane.f32.xlu1 %v1506_v50 }
0x126f   :  { %2773 = vpow2.f32 %v1775_v59 }
0x1270   :  { %v2768_v51 = vpop.eup %2767 }
0x1271   :  { %v1640_v17 = vsel %vm391_vm5, %v2768_v51, 0.0 }
0x1272   :  { %1641 = vadd.xlane.f32.xlu0 %v1640_v17 }
0x1274   :  { %v2770_v52 = vpop.eup %2769 }
0x1275   :  { %v1643_v54 = vsel %vm395_vm6, %v2770_v52, 0.0 }
0x1276   :  { %1644 = vadd.xlane.f32.xlu1 %v1643_v54 }
0x1278   :  { %v3292_v22 = vpop.eup %2771 }
0x1279   :  { %v1777_v55 = vsel %vm391_vm5, %v3292_v22, 0.0 }
0x127a   :  { %1778 = vadd.xlane.f32.xlu0 %v1777_v55  ;;  %v2701_v55 = vld [vmem:[%s3444_s8 + $0x10] sm:$0xff]  }
0x127c   :  { %v2774_v60 = vpop.eup %2773 }
0x127d   :  { %v1780_v43 = vsel %vm395_vm6, %v2774_v60, 0.0 }
0x1287   :  { %1514 = vrot.lane.b32.xlu1 %v3231_v33, %s3486_s2 }
0x128b   :  { %1651 = vrot.lane.b32.xlu1 %v3231_v33, %s3487_s22 }
0x1290   :  { %1381 = vrot.lane.b32.xlu0 %v3231_v33, %s3488_s28 }
0x12af   :  { %1781 = vadd.xlane.f32.xlu1 %v1780_v43 }
0x12c0   :  { %1788 = vrot.lane.b32.xlu1 %v3231_v33, %s3489_s30 }
0x12eb   :  { %v1372_v63 = vpop.xlane.xlu0 %1371 }
0x12ef   :  { %v1375_v61 = vpop.xlane.xlu1 %1374 }
0x12f0   :  { %2775 = vrcp.f32 %v1375_v61 }
0x12f1   :  { %2777 = vrcp.f32 %v1372_v63 }
0x12f3   :  { %v1505_v0 = vpop.xlane.xlu0 %1504 }
0x12f7   :  { %v1508_v48 = vpop.xlane.xlu1 %1507 }
0x12f8   :  { %2779 = vrcp.f32 %v1508_v48 }
0x12f9   :  { %2781 = vrcp.f32 %v1505_v0 }
0x12fb   :  { %v1642_v2 = vpop.xlane.xlu0 %1641 }
0x12fd   :  { %v2776_v3 = vpop.eup %2775 }
0x12fe   :  { %v2778_v62 = vpop.eup %2777  ;;  %v1379_v5 = vmul.f32 %v2776_v3, %v2762_v39 }
0x12ff   :  { %v1645_v1 = vpop.xlane.xlu1 %1644  ;;  %v1378_v33 = vmul.f32 %v2778_v62, %v2760_v32 }
0x1300   :  { %2783 = vrcp.f32 %v1645_v1 }
0x1301   :  { %2785 = vrcp.f32 %v1642_v2  ;;  %v1380_v9 = vpack.c.bf16 %v1379_v5, %v1378_v33  ;;  %v2365_v5 = vld [vmem:[%s3445_s9 + $0x1] ss:$0 sm:$0xff] }
0x1303   :  { %v1779_v4 = vpop.xlane.xlu0 %1778  ;;  %v1515_v8 = vpop.permute.xlu1 %1514 }
0x1304   :  { %v1520_v11 = vsel %vm421_vm7, %v1515_v8, 0  ;;  %2787 = vrcp.f32 %v1779_v4 }
0x1305   :  { %v2780_v10 = vpop.eup %2779 }
0x1306   :  { %v2782_v12 = vpop.eup %2781  ;;  %v1512_v13 = vmul.f32 %v2780_v10, %v2766_v49 }
0x1307   :  { %v1382_v6 = vpop.permute.xlu0 %1381  ;;  %v1511_v14 = vmul.f32 %v2782_v12, %v2764_v45  ;;  %v1652_v15 = vpop.permute.xlu1 %1651 }
0x1308   :  { %v1387_v7 = vsel %vm421_vm7, %v1382_v6, 0  ;;  %v1657_v19 = vsel %vm421_vm7, %v1652_v15, 0 }
0x1309   :  { %2578 = vmatpush3.bf16.msra.mxu1 %v1387_v7  ;;  %v1513_v16 = vpack.c.bf16 %v1512_v13, %v1511_v14 }
0x130a   :  { %2589 = vmatprep.subr.bf16.mxu1 %v2806_v35 }
0x130c   :  { %2580 = vmatmul.mubr.msk.bf16.vlgmr.msra.gmra.mxu1 %vm391_vm5, %v1380_v9 }
0x130d   :  { %2590 = vmatpush3.bf16.msra.mxu1 %v1520_v11  ;;  %2591 = vmatprep.mubr.msk.bf16.mxu1 %vm2807_vm3, %v2806_v35  ;;  %v2784_v18 = vpop.eup %2783 }
0x130e   :  { %2601 = vmatprep.subr.bf16.mxu1 %v2806_v35  ;;  %v2786_v20 = vpop.eup %2785  ;;  %v1649_v21 = vmul.f32 %v2784_v18, %v2770_v52 }
0x130f   :  { %v1648_v23 = vmul.f32 %v2786_v20, %v2768_v51 }
0x1311   :  { %v1650_v24 = vpack.c.bf16 %v1649_v21, %v1648_v23  ;;  %v2788_v28 = vpop.eup %2787 }
0x1312   :  { %v1785_v30 = vmul.f32 %v2788_v28, %v3292_v22  ;;  %v2700_v22 = vld [vmem:[%s3444_s8 + $0x18] sm:$0xff]  }
0x1313   :  { %2620 = vmatpush3.bf16.msra.mxu0 %v2700_v22 }
0x1314   :  { %2592 = vmatmul.mubr.msk.bf16.vlgmr.msra.gmra.mxu1 %vm391_vm5, %v1513_v16  ;;  %2621 = vmatprep.subr.bf16.mxu0 %v2806_v35 }
0x1315   :  { %2602 = vmatpush3.bf16.msra.mxu1 %v1657_v19  ;;  %2603 = vmatprep.mubr.msk.bf16.mxu1 %vm2807_vm3, %v2806_v35 }
0x1316   :  { %2613 = vmatprep.subr.bf16.mxu1 %v2806_v35 }
0x1317   :  { %2622 = vmatpush3.bf16.msra.mxu0 %v2701_v55 }
0x1318   :  { %2635 = vmatprep.subr.bf16.mxu0 %v2806_v35 }
0x131c   :  { %2604 = vmatmul.mubr.msk.bf16.vlgmr.msra.gmra.mxu1 %vm391_vm5, %v1650_v24  ;;  %v2703_v24 = vld [vmem:[%s3446_s12 + $0x18] sm:$0xff]  }
0x131d   :  { %2615 = vmatprep.mubr.msk.bf16.mxu1 %vm2807_vm3, %v2806_v35 }
0x1338   :  { %v1782_v25 = vpop.xlane.xlu1 %1781 }
0x1339   :  { %2789 = vrcp.f32 %v1782_v25  ;;  %v2704_v25 = vld [vmem:[%s3446_s12 + $0x10] sm:$0xff]  }
0x133c   :  { %v1789_v26 = vpop.permute.xlu1 %1788 }
0x133d   :  { %v1794_v27 = vsel %vm421_vm7, %v1789_v26, 0 }
0x133e   :  { %2614 = vmatpush3.bf16.msra.mxu1 %v1794_v27 }
0x133f   :  { %2627 = vmatprep.subr.bf16.mxu1 %v2806_v35 }
0x1346   :  { %v2790_v29 = vpop.eup %2789 }
0x1347   :  { %v1786_v31 = vmul.f32 %v2790_v29, %v2774_v60 }
0x1349   :  { %v1787_v32 = vpack.c.bf16 %v1786_v31, %v1785_v30 }
0x134b   :  { %2616 = vmatmul.mubr.msk.bf16.vlgmr.msra.gmra.mxu1 %vm391_vm5, %v1787_v32 }
0x134c   :  { %2631 = vmatprep.mubr.msk.bf16.mxu1 %vm2807_vm3, %v2806_v35  ;;  %2628 = vmatpush3.bf16.msra.mxu1 %v2703_v24 }
0x134d   :  { %2629 = vmatprep.subr.bf16.mxu1 %v2806_v35 }
0x1350   :  { %2630 = vmatpush3.bf16.msra.mxu1 %v2704_v25 }
0x1351   :  { %2647 = vmatprep.subr.bf16.mxu1 %v2806_v35 }
0x13cc   :  { %v1423_v34 = vpop.f32.mrf.mxu1 }
0x13cd   :  { %v2408_v36 = vpack.c.bf16 %v1423_v34, %v1423_v34 }
0x13ce   :  { %v2581_v37 = vpop.f32.mrf.mxu1 }
0x13cf   :  { %1438 = vst.msk [vmem:[#allocation2] sm:$0xf] %vm474_vm8, %v2408_v36  ;;  %v2368_v36 = vld [vmem:[%s3447_s10 + $0x1] ss:$0 sm:$0xff] }
0x13d0   :  { %v1426_v38 = vpop.f32.mrf.mxu1 }
0x13d1   :  { %v2409_v39 = vpack.c.bf16 %v1426_v38, %v1426_v38 }
0x13d2   :  { %v2582_v40 = vpop.f32.mrf.mxu1 }
0x13d3   :  { %1439 = vst.msk [vmem:[#allocation2 + $0x4] sm:$0x1] %vm476_vm9, %v2409_v39  ;;  %v2369_v40 = vld [vmem:[%s3448_s11 + $0x1] ss:$0 sm:$0xff] }
0x13d4   :  { %v1556_v41 = vpop.f32.mrf.mxu1 }
0x13d5   :  { %v2410_v42 = vpack.c.bf16 %v1556_v41, %v1556_v41 }
0x13d6   :  { %v2593_v44 = vpop.f32.mrf.mxu1 }
0x13d7   :  { %1569 = vrot.lane.b32.xlu0 %v2410_v42, %s3490_s29 }
0x13d8   :  { %v1559_v45 = vpop.f32.mrf.mxu1 }
0x13d9   :  { %v2411_v46 = vpack.c.bf16 %v1559_v45, %v1559_v45 }
0x13da   :  { %v2594_v47 = vpop.f32.mrf.mxu1 }
0x13db   :  { %1571 = vrot.lane.b32.xlu1 %v2411_v46, %s3490_s29  ;;  %v2705_v46 = vld [vmem:[%s3449_s14 + $0x38] sm:$0xff]   ;;  %v2706_v47 = vld [vmem:[%s3449_s14 + $0x30] sm:$0xff]  }
0x13dc   :  { %v1693_v49 = vpop.f32.mrf.mxu1 }
0x13dd   :  { %v2412_v50 = vpack.c.bf16 %v1693_v49, %v1693_v49  ;;  %v2707_v49 = vld [vmem:[%s3449_s14 + $0x28] sm:$0xff]  }
0x13de   :  { %v2605_v51 = vpop.f32.mrf.mxu1 }
0x13df   :  { %1706 = vrot.lane.b32.xlu0 %v2412_v50, %s3491_s23  ;;  %v2708_v50 = vld [vmem:[%s3449_s14 + $0x20] sm:$0xff]  }
0x13e0   :  { %v1696_v17 = vpop.f32.mrf.mxu1  ;;  %v2375_v51 = vld [vmem:[%s3450_s13 + $0x1] ss:$0 sm:$0xff] }
0x13e1   :  { %v2413_v52 = vpack.c.bf16 %v1696_v17, %v1696_v17 }
0x13e2   :  { %v2606_v54 = vpop.f32.mrf.mxu1 }
0x13e3   :  { %1708 = vrot.lane.b32.xlu1 %v2413_v52, %s3491_s23 }
0x140b   :  { %v1830_v56 = vpop.f32.mrf.mxu1 }
0x140c   :  { %v2414_v58 = vpack.c.bf16 %v1830_v56, %v1830_v56 }
0x140d   :  { %v2617_v59 = vpop.f32.mrf.mxu1 }
0x140e   :  { %1843 = vrot.lane.b32.xlu0 %v2414_v58, %s3492_s1 }
0x140f   :  { %v1833_v60 = vpop.f32.mrf.mxu1 }
0x1410   :  { %v2415_v43 = vpack.c.bf16 %v1833_v60, %v1833_v60 }
0x1411   :  { %v2618_v61 = vpop.f32.mrf.mxu1 }
0x1412   :  { %1845 = vrot.lane.b32.xlu1 %v2415_v43, %s3492_s1 }
0x1449   :  { %v1570_v63 = vpop.permute.xlu0 %1569 }
0x144a   :  { %1575 = vst.msk [vmem:[#allocation2] sm:$0xf] %vm613_vm10, %v1570_v63 }
0x144d   :  { %v1572_v0 = vpop.permute.xlu1 %1571 }
0x144e   :  { %1576 = vst.msk [vmem:[#allocation2 + $0x4] sm:$0x1] %vm615_vm11, %v1572_v0 }
0x1451   :  { %v1707_v48 = vpop.permute.xlu0 %1706 }
0x1452   :  { %1712 = vst.msk [vmem:[#allocation2] sm:$0xf] %vm752_vm12, %v1707_v48 }
0x1455   :  { %v1709_v2 = vpop.permute.xlu1 %1708 }
0x1456   :  { %1713 = vst.msk [vmem:[#allocation2 + $0x4] sm:$0x1] %vm754_vm13, %v1709_v2 }
0x1480   :  { %v1844_v3 = vpop.permute.xlu0 %1843 }
0x1481   :  { %1849 = vst.msk [vmem:[#allocation2] sm:$0xf] %vm891_vm14, %v1844_v3 }
0x1484   :  { %v1846_v1 = vpop.permute.xlu1 %1845 }
0x1485   :  { %1850 = vst.msk [vmem:[#allocation2 + $0x4] sm:$0x1] %vm893_vm15, %v1846_v1 }
0x148c   :  { %v2702_v4 = vld [vmem:[#allocation2] sm:$0x1f]  }
0x148d   :  { %2624 = vmatmul.mubr.msk.bf16.vlgmr.msra.gmra.mxu0 %vm226_vm1, %v2702_v4 }
0x148e   :  { %2643 = vmatprep.mubr.msk.bf16.mxu0 %vm2807_vm3, %v2806_v35  ;;  %2636 = vmatpush3.bf16.msra.mxu0 %v2705_v46 }
0x148f   :  { %2637 = vmatprep.subr.bf16.mxu0 %v2806_v35 }
0x1492   :  { %2638 = vmatpush3.bf16.msra.mxu0 %v2706_v47 }
0x1493   :  { %2639 = vmatprep.subr.bf16.mxu0 %v2806_v35 }
0x1496   :  { %2640 = vmatpush3.bf16.msra.mxu0 %v2707_v49 }
0x1497   :  { %2641 = vmatprep.subr.bf16.mxu0 %v2806_v35 }
0x149a   :  { %2642 = vmatpush3.bf16.msra.mxu0 %v2708_v50 }
0x154d   :  { %v1912_v62 = vpop.f32.mrf.mxu0 }
0x154e   :  { %v1919_v6 = vadd.f32 %v1912_v62, %v3198_v53 }
0x154f   :  { %v2625_v7 = vpop.f32.mrf.mxu0 }
0x1550   :  { %v3355_v33 = vadd.f32 %v2365_v5, %v1919_v6 }
0x1551   :  { %v1915_v8 = vpop.f32.mrf.mxu0 }
0x1552   :  { %v1920_v9 = vadd.f32 %v1915_v8, %v3203_v57  ;;  %v1935_v10 = vsel %vm226_vm1, %v3355_v33, 0.0 }
0x1553   :  { %1936 = vadd.xlane.f32.xlu0 %v1935_v10  ;;  %v2626_v11 = vpop.f32.mrf.mxu0 }
0x1554   :  { %v3360_v12 = vadd.f32 %v2365_v5, %v1920_v9 }
0x1556   :  { %v1938_v13 = vsel %vm230_vm2, %v3360_v12, 0.0 }
0x1557   :  { %1939 = vadd.xlane.f32.xlu1 %v1938_v13  ;;  %v2393_v13 = vld [vmem:[%s3451_s15 + $0x1] ss:$0 sm:$0xff] }
0x15dc   :  { %v1937_v14 = vpop.xlane.xlu0 %1936 }
0x15dd   :  { %v1941_v15 = vmul.f32 0.03125, %v1937_v14 }
0x15df   :  { %v1943_v53 = vsub.f32 %v3355_v33, %v1941_v15 }
0x15e0   :  { %v1940_v16 = vpop.xlane.xlu1 %1939 }
0x15e1   :  { %v1942_v18 = vmul.f32 0.03125, %v1940_v16  ;;  %v1945_v19 = vmul.f32 %v1943_v53, %v1943_v53 }
0x15e3   :  { %v1944_v57 = vsub.f32 %v3360_v12, %v1942_v18  ;;  %v1947_v20 = vsel %vm226_vm1, %v1945_v19, 0.0 }
0x15e4   :  { %1948 = vadd.xlane.f32.xlu0 %v1947_v20 }
0x15e5   :  { %v1946_v21 = vmul.f32 %v1944_v57, %v1944_v57 }
0x15e7   :  { %v1950_v23 = vsel %vm230_vm2, %v1946_v21, 0.0 }
0x15e8   :  { %1951 = vadd.xlane.f32.xlu0 %v1950_v23 }
0x166d   :  { %v1949_v26 = vpop.xlane.xlu0 %1948 }
0x166e   :  { %v1953_v27 = vmul.f32 0.03125, %v1949_v26 }
0x1670   :  { %v1955_v28 = vadd.f32 1e-12, %v1953_v27 }
0x1671   :  { %v1952_v29 = vpop.xlane.xlu0 %1951 }
0x1672   :  { %2791 = vrsqrt.f32 %v1955_v28  ;;  %v1954_v30 = vmul.f32 0.03125, %v1952_v29 }
0x1674   :  { %v1956_v31 = vadd.f32 1e-12, %v1954_v30 }
0x1676   :  { %2793 = vrsqrt.f32 %v1956_v31  ;;  %v2709_v31 = vld [vmem:[%s3452_s18 + $0x8] sm:$0xff]  }
0x167f   :  { %v2792_v32 = vpop.eup %2791 }
0x1680   :  { %v1959_v34 = vmul.f32 %v2792_v32, %v1943_v53  ;;  %v2710_v32 = vld [vmem:[%s3452_s18] sm:$0xff]  }
0x1682   :  { %v1967_v39 = vmul.f32 %v2368_v36, %v1959_v34 }
0x1683   :  { %v2794_v37 = vpop.eup %2793 }
0x1684   :  { %v1960_v38 = vmul.f32 %v2794_v37, %v1944_v57  ;;  %v1975_v42 = vadd.f32 %v2369_v40, %v1967_v39 }
0x1686   :  { %v1968_v41 = vmul.f32 %v2368_v36, %v1960_v38 }
0x1688   :  { %v1976_v44 = vadd.f32 %v2369_v40, %v1968_v41 }
0x168a   :  { %v1977_v45 = vpack.c.bf16 %v1976_v44, %v1975_v42  ;;  %v2394_v44 = vld [vmem:[%s3453_s16] ss:$0 sm:$0xff] }
0x168c   :  { %2632 = vmatmul.mubr.msk.bf16.vlgmr.msra.gmra.mxu1 %vm226_vm1, %v1977_v45 }
0x168d   :  { %2651 = vmatprep.mubr.msk.bf16.mxu1 %vm2807_vm3, %v2806_v35  ;;  %2648 = vmatpush3.bf16.msra.mxu1 %v2709_v31 }
0x168e   :  { %2649 = vmatprep.subr.bf16.mxu1 %v2806_v35  ;;  %v2395_v35 = vld [vmem:[%s3454_s17] ss:$0 sm:$0xff] }
0x1691   :  { %2650 = vmatpush3.bf16.msra.mxu1 %v2710_v32 }
0x174c   :  { %v2040_v17 = vpop.f32.mrf.mxu1 }
0x174d   :  { %v2041_v52 = vadd.f32 %v2375_v51, %v2040_v17 }
0x174e   :  { %v2633_v54 = vpop.f32.mrf.mxu1 }
0x174f   :  { %v2049_v22 = vmul.f32 0.044715, %v2041_v52  ;;  %v2047_v5 = vmul.f32 0.5, %v2041_v52 }
0x1750   :  { %v2043_v55 = vpop.f32.mrf.mxu1 }
0x1751   :  { %v2051_v56 = vmul.f32 %v2049_v22, %v2041_v52  ;;  %v2044_v58 = vadd.f32 %v2375_v51, %v2043_v55 }
0x1752   :  { %v2634_v59 = vpop.f32.mrf.mxu1 }
0x1753   :  { %v2053_v60 = vmul.f32 %v2051_v56, %v2041_v52  ;;  %v2050_v43 = vmul.f32 0.044715, %v2044_v58  ;;  %v2048_v6 = vmul.f32 0.5, %v2044_v58 }
0x1755   :  { %v2055_v61 = vadd.f32 %v2053_v60, %v2041_v52  ;;  %v2052_v63 = vmul.f32 %v2050_v43, %v2044_v58  ;;  %v2396_v52 = vld [vmem:[%s3455_s19] ss:$0 sm:$0xff] }
0x1757   :  { %v2057_v0 = vmul.f32 0.7978846, %v2055_v61  ;;  %v2054_v48 = vmul.f32 %v2052_v63, %v2044_v58 }
0x1759   :  { %2795 = vtanh.f32 %v2057_v0  ;;  %v2056_v2 = vadd.f32 %v2054_v48, %v2044_v58 }
0x175b   :  { %v2058_v3 = vmul.f32 0.7978846, %v2056_v2 }
0x175d   :  { %2797 = vtanh.f32 %v2058_v3 }
0x1766   :  { %v2796_v1 = vpop.eup %2795 }
0x1767   :  { %v2061_v4 = vadd.f32 1.0, %v2796_v1 }
0x1769   :  { %v2063_v8 = vmul.f32 %v2061_v4, %v2047_v5 }
0x176a   :  { %v2798_v62 = vpop.eup %2797 }
0x176b   :  { %v2062_v7 = vadd.f32 1.0, %v2798_v62 }
0x176d   :  { %v2064_v9 = vmul.f32 %v2062_v7, %v2048_v6 }
0x176f   :  { %v2065_v10 = vpack.c.bf16 %v2064_v9, %v2063_v8 }
0x1771   :  { %2644 = vmatmul.mubr.msk.bf16.vlgmr.msra.gmra.mxu0 %vm175_vm0, %v2065_v10 }
0x1831   :  { %v2136_v11 = vpop.f32.mrf.mxu0 }
0x1832   :  { %v2143_v14 = vadd.f32 %v2136_v11, %v3355_v33 }
0x1833   :  { %v2645_v15 = vpop.f32.mrf.mxu0 }
0x1834   :  { %v2153_v53 = vadd.f32 %v2393_v13, %v2143_v14 }
0x1835   :  { %v2139_v16 = vpop.f32.mrf.mxu0 }
0x1836   :  { %v2144_v18 = vadd.f32 %v2139_v16, %v3360_v12  ;;  %v2157_v19 = vsel %vm226_vm1, %v2153_v53, 0.0 }
0x1837   :  { %2158 = vadd.xlane.f32.xlu0 %v2157_v19  ;;  %v2646_v57 = vpop.f32.mrf.mxu0 }
0x1838   :  { %v2154_v20 = vadd.f32 %v2393_v13, %v2144_v18 }
0x183a   :  { %v2160_v21 = vsel %vm230_vm2, %v2154_v20, 0.0 }
0x183b   :  { %2161 = vadd.xlane.f32.xlu1 %v2160_v21 }
0x18c0   :  { %v2159_v23 = vpop.xlane.xlu0 %2158 }
0x18c1   :  { %v2163_v24 = vmul.f32 0.03125, %v2159_v23 }
0x18c3   :  { %v2165_v25 = vsub.f32 %v2153_v53, %v2163_v24 }
0x18c4   :  { %v2162_v26 = vpop.xlane.xlu1 %2161 }
0x18c5   :  { %v2164_v27 = vmul.f32 0.03125, %v2162_v26  ;;  %v2167_v28 = vmul.f32 %v2165_v25, %v2165_v25 }
0x18c7   :  { %v2166_v33 = vsub.f32 %v2154_v20, %v2164_v27  ;;  %v2169_v29 = vsel %vm226_vm1, %v2167_v28, 0.0 }
0x18c8   :  { %2170 = vadd.xlane.f32.xlu0 %v2169_v29 }
0x18c9   :  { %v2168_v30 = vmul.f32 %v2166_v33, %v2166_v33 }
0x18cb   :  { %v2172_v12 = vsel %vm230_vm2, %v2168_v30, 0.0 }
0x18cc   :  { %2173 = vadd.xlane.f32.xlu1 %v2172_v12 }
0x1951   :  { %v2171_v34 = vpop.xlane.xlu0 %2170 }
0x1952   :  { %v2175_v36 = vmul.f32 0.03125, %v2171_v34 }
0x1954   :  { %v2177_v37 = vadd.f32 1e-12, %v2175_v36 }
0x1955   :  { %v2174_v38 = vpop.xlane.xlu1 %2173 }
0x1956   :  { %2799 = vrsqrt.f32 %v2177_v37  ;;  %v2176_v39 = vmul.f32 0.03125, %v2174_v38 }
0x1958   :  { %v2178_v40 = vadd.f32 1e-12, %v2176_v39 }
0x195a   :  { %2801 = vrsqrt.f32 %v2178_v40 }
0x1963   :  { %v2800_v41 = vpop.eup %2799 }
0x1964   :  { %v2181_v42 = vmul.f32 %v2800_v41, %v2165_v25 }
0x1966   :  { %v2189_v47 = vmul.f32 %v2394_v44, %v2181_v42 }
0x1967   :  { %v2802_v45 = vpop.eup %2801 }
0x1968   :  { %v2182_v46 = vmul.f32 %v2802_v45, %v2166_v33  ;;  %v2197_v50 = vadd.f32 %v2395_v35, %v2189_v47 }
0x196a   :  { %v2190_v49 = vmul.f32 %v2394_v44, %v2182_v46 }
0x196c   :  { %v2198_v51 = vadd.f32 %v2395_v35, %v2190_v49 }
0x196e   :  { %v2199_v17 = vpack.c.bf16 %v2198_v51, %v2197_v50 }
0x1970   :  { %2652 = vmatmul.mubr.msk.bf16.vlgmr.msra.gmra.mxu1 %vm226_vm1, %v2199_v17 }
0x1a30   :  { %v2260_v54 = vpop.f32.mrf.mxu1 }
0x1a31   :  { %v2261_v22 = vadd.f32 %v2396_v52, %v2260_v54 }
0x1a32   :  { %v2653_v55 = vpop.f32.mrf.mxu1 }
0x1a33   :  { %2267 = vst [vmem:[%s3456_s20] sm:$0xff] %v2261_v22 }
0x1a34   :  { %v2263_v56 = vpop.f32.mrf.mxu1 }
0x1a35   :  { %v2264_v58 = vadd.f32 %v2396_v52, %v2263_v56 }
0x1a36   :  { %v2654_v59 = vpop.f32.mrf.mxu1 }
0x1a37   :  { %2268 = vst [vmem:[%s3456_s20 + $0x8] sm:$0x3] %v2264_v58 }

</bundles_post_ra>
